<compile_context>
chip_gen: v6e
topology: v6e:2x2x1
jax: 0.10.0
libtpu: 0.0.40
codegen_flags: <defaults>
</compile_context>

<pallas_src>
import jax
import jax.numpy as jnp
from jax.experimental import pallas as pl
from jax.experimental.pallas import tpu as pltpu

KH = KW = 5
PAD = 2
LANES = 128


def dwconv5x5_kernel(x_ref, w_ref, o_ref, xpad_ref):
    # x_ref:    (Gt, H,   W,   128)  unpadded input lane-groups
    # w_ref:    (Gt, 5,   5,   128)  depthwise filters (channels on lanes)
    # o_ref:    (Gt, H,   W,   128)  output
    # xpad_ref: (Gt, H+4, W+4, 128)  VMEM scratch for the zero-padded input
    gt, h, w, _ = o_ref.shape

    # Fused zero-padding: zero the scratch, then write the interior window.
    xpad_ref[...] = jnp.zeros_like(xpad_ref)
    xpad_ref[:, PAD:PAD + h, PAD:PAD + w, :] = x_ref[...]

    def group_body(g, carry):
        acc = jnp.zeros((h, w, LANES), jnp.float32)
        # 25 statically-unrolled shifted multiply-accumulates (pure VPU work,
        # lane dimension = channels).
        for kh in range(KH):
            for kw in range(KW):
                xs = xpad_ref[g, kh:kh + h, kw:kw + w, :].astype(jnp.float32)
                ws = w_ref[g, kh, kw, :].astype(jnp.float32)   # (128,) resident
                acc = acc + xs * ws
        o_ref[g] = acc.astype(o_ref.dtype)
        return carry

    jax.lax.fori_loop(0, gt, group_body, 0)


def depthwise_conv5x5(x_nchw, weight, *, steps=1):
    """x_nchw: (1, C, H, W); weight: (C, 1, 5, 5) (PyTorch depthwise layout).

    steps=1 is best on v5e/v6e (single TensorCore).  On v7x use steps=3 so the
    "parallel" group axis can be sharded across both TensorCores.
    """
    n, c, h, w = x_nchw.shape
    assert n == 1, "kernel written for batch 1 (as in the reference module)"
    assert c % LANES == 0, "channel count must be lane-aligned (multiple of 128)"
    g = c // LANES
    assert g % steps == 0, "steps must divide the number of 128-channel groups"
    gt = g // steps

    # Layout glue required by the NCHW module interface:
    #   (1,C,H,W) -> (G,H,W,128)   and   (C,1,5,5) -> (G,5,5,128)
    x_g = jnp.transpose(x_nchw[0].reshape(g, LANES, h, w), (0, 2, 3, 1))
    w_g = jnp.transpose(weight[:, 0].reshape(g, LANES, KH, KW), (0, 2, 3, 1))

    out_g = pl.pallas_call(
        dwconv5x5_kernel,
        out_shape=jax.ShapeDtypeStruct((g, h, w, LANES), x_nchw.dtype),
        grid_spec=pltpu.PrefetchScalarGridSpec(
            num_scalar_prefetch=0,
            grid=(steps,),
            in_specs=[
                pl.BlockSpec((gt, h, w, LANES), lambda i: (i, 0, 0, 0)),
                pl.BlockSpec((gt, KH, KW, LANES), lambda i: (i, 0, 0, 0)),
            ],
            out_specs=pl.BlockSpec((gt, h, w, LANES), lambda i: (i, 0, 0, 0)),
            scratch_shapes=[
                pltpu.VMEM((gt, h + 2 * PAD, w + 2 * PAD, LANES), x_nchw.dtype)
            ],
        ),
        compiler_params=pltpu.CompilerParams(
            dimension_semantics=("parallel",)),
    )(x_g, w_g)

    # (G,H,W,128) -> (1,C,H,W)
    return jnp.transpose(out_g, (0, 3, 1, 2)).reshape(1, c, h, w)


if __name__ == "__main__":
    key = jax.random.PRNGKey(0)
    kx, kw = jax.random.split(key)

    # Shapes consistent with the module's forward: x276 = (1, 1152, 7, 7)
    C, H, W = 1152, 7, 7
    x = jax.random.normal(kx, (1, C, H, W), dtype=jnp.float32)
    weight = jax.random.normal(kw, (C, 1, KH, KW), dtype=jnp.float32) * 0.05

    out = depthwise_conv5x5(x, weight)
    out = jax.block_until_ready(out)

    # Reference check against XLA's grouped convolution (same semantics as
    # torch.nn.Conv2d(..., groups=C, bias=False)).
    ref = jax.lax.conv_general_dilated(
        x, weight,
        window_strides=(1, 1),
        padding=((PAD, PAD), (PAD, PAD)),
        dimension_numbers=("NCHW", "OIHW", "NCHW"),
        feature_group_count=C,
    )
    assert out.shape == (1, C, H, W)
    assert jnp.allclose(out, ref, atol=1e-4, rtol=1e-4), "mismatch vs reference conv"

    print("KERNEL_OK")
</pallas_src>

<mosaic_0001>
module attributes {stable_mosaic.version = 11 : i64} {
  func.func @dwconv5x5_kernel(%arg0: i32, %arg1: memref<9x7x7x128xf32, #tpu.memory_space<vmem>>, %arg2: memref<9x5x5x128xf32, #tpu.memory_space<vmem>>, %arg3: memref<9x7x7x128xf32, #tpu.memory_space<vmem>>, %arg4: memref<9x11x11x128xf32, #tpu.memory_space<vmem>>) attributes {dimension_semantics = [#tpu.dimension_semantics<parallel>], iteration_bounds = array<i64: 1>, scalar_prefetch = 0 : i64, scratch_operands = 1 : i64, tpu.core_type = #tpu.core_type<tc>, window_params = [{transform_indices = @transform_0, window_bounds = array<i64: 9, 7, 7, 128>}, {transform_indices = @transform_1, window_bounds = array<i64: 9, 5, 5, 128>}, {transform_indices = @transform_2, window_bounds = array<i64: 9, 7, 7, 128>}]} {
    %cst = arith.constant 0.000000e+00 : f32
    %0 = vector.broadcast %cst : f32 to vector<9x11x11x128xf32>
    %c0 = arith.constant 0 : index
    %c0_0 = arith.constant 0 : index
    %c0_1 = arith.constant 0 : index
    %c0_2 = arith.constant 0 : index
    %1 = vector.load %arg4[%c0, %c0_0, %c0_1, %c0_2] : memref<9x11x11x128xf32, #tpu.memory_space<vmem>>, vector<9x11x11x128xf32>
    tpu.vector_store %arg4[%c0, %c0_0, %c0_1, %c0_2], %0 {strides = array<i32>} : memref<9x11x11x128xf32, #tpu.memory_space<vmem>>, vector<9x11x11x128xf32>,
    %c0_3 = arith.constant 0 : index
    %c0_4 = arith.constant 0 : index
    %c0_5 = arith.constant 0 : index
    %c0_6 = arith.constant 0 : index
    %2 = vector.load %arg1[%c0_3, %c0_4, %c0_5, %c0_6] : memref<9x7x7x128xf32, #tpu.memory_space<vmem>>, vector<9x7x7x128xf32>
    %c0_7 = arith.constant 0 : index
    %c2 = arith.constant 2 : index
    %c2_8 = arith.constant 2 : index
    %c0_9 = arith.constant 0 : index
    %3 = vector.load %arg4[%c0_7, %c2, %c2_8, %c0_9] : memref<9x11x11x128xf32, #tpu.memory_space<vmem>>, vector<9x7x7x128xf32>
    tpu.vector_store %arg4[%c0_7, %c2, %c2_8, %c0_9], %2 {strides = array<i32>} : memref<9x11x11x128xf32, #tpu.memory_space<vmem>>, vector<9x7x7x128xf32>,
    %c0_i32 = arith.constant 0 : i32
    %c9_i32 = arith.constant 9 : i32
    %4 = arith.addi %c0_i32, %c9_i32 : i32
    %c1_i32 = arith.constant 1 : i32
    scf.for %arg5 = %c0_i32 to %4 step %c1_i32  : i32 {
      %cst_11 = arith.constant 0.000000e+00 : f32
      %5 = vector.broadcast %cst_11 : f32 to vector<7x7x128xf32>
      %6 = arith.index_cast %arg5 : i32 to index
      %c0_12 = arith.constant 0 : index
      %c0_13 = arith.constant 0 : index
      %c0_14 = arith.constant 0 : index
      %7 = vector.load %arg4[%6, %c0_12, %c0_13, %c0_14] : memref<9x11x11x128xf32, #tpu.memory_space<vmem>>, vector<1x7x7x128xf32>
      %8 = vector.shape_cast %7 : vector<1x7x7x128xf32> to vector<7x7x128xf32>
      %9 = arith.index_cast %arg5 : i32 to index
      %c0_15 = arith.constant 0 : index
      %c0_16 = arith.constant 0 : index
      %c0_17 = arith.constant 0 : index
      %10 = vector.load %arg2[%9, %c0_15, %c0_16, %c0_17] : memref<9x5x5x128xf32, #tpu.memory_space<vmem>>, vector<1x1x1x128xf32>
      %11 = vector.shape_cast %10 : vector<1x1x1x128xf32> to vector<128xf32>
      %12 = vector.shape_cast %11 : vector<128xf32> to vector<1x1x128xf32>
      %13 = vector.broadcast %12 : vector<1x1x128xf32> to vector<7x7x128xf32>
      %14 = arith.mulf %8, %13 : vector<7x7x128xf32>
      %15 = arith.addf %5, %14 : vector<7x7x128xf32>
      %16 = arith.index_cast %arg5 : i32 to index
      %c0_18 = arith.constant 0 : index
      %c1 = arith.constant 1 : index
      %c0_19 = arith.constant 0 : index
      %17 = vector.load %arg4[%16, %c0_18, %c1, %c0_19] : memref<9x11x11x128xf32, #tpu.memory_space<vmem>>, vector<1x7x7x128xf32>
      %18 = vector.shape_cast %17 : vector<1x7x7x128xf32> to vector<7x7x128xf32>
      %19 = arith.index_cast %arg5 : i32 to index
      %c0_20 = arith.constant 0 : index
      %c1_21 = arith.constant 1 : index
      %c0_22 = arith.constant 0 : index
      %20 = vector.load %arg2[%19, %c0_20, %c1_21, %c0_22] : memref<9x5x5x128xf32, #tpu.memory_space<vmem>>, vector<1x1x1x128xf32>
      %21 = vector.shape_cast %20 : vector<1x1x1x128xf32> to vector<128xf32>
      %22 = vector.shape_cast %21 : vector<128xf32> to vector<1x1x128xf32>
      %23 = vector.broadcast %22 : vector<1x1x128xf32> to vector<7x7x128xf32>
      %24 = arith.mulf %18, %23 : vector<7x7x128xf32>
      %25 = arith.addf %15, %24 : vector<7x7x128xf32>
      %26 = arith.index_cast %arg5 : i32 to index
      %c0_23 = arith.constant 0 : index
      %c2_24 = arith.constant 2 : index
      %c0_25 = arith.constant 0 : index
      %27 = vector.load %arg4[%26, %c0_23, %c2_24, %c0_25] : memref<9x11x11x128xf32, #tpu.memory_space<vmem>>, vector<1x7x7x128xf32>
      %28 = vector.shape_cast %27 : vector<1x7x7x128xf32> to vector<7x7x128xf32>
      %29 = arith.index_cast %arg5 : i32 to index
      %c0_26 = arith.constant 0 : index
      %c2_27 = arith.constant 2 : index
      %c0_28 = arith.constant 0 : index
      %30 = vector.load %arg2[%29, %c0_26, %c2_27, %c0_28] : memref<9x5x5x128xf32, #tpu.memory_space<vmem>>, vector<1x1x1x128xf32>
      %31 = vector.shape_cast %30 : vector<1x1x1x128xf32> to vector<128xf32>
      %32 = vector.shape_cast %31 : vector<128xf32> to vector<1x1x128xf32>
      %33 = vector.broadcast %32 : vector<1x1x128xf32> to vector<7x7x128xf32>
      %34 = arith.mulf %28, %33 : vector<7x7x128xf32>
      %35 = arith.addf %25, %34 : vector<7x7x128xf32>
      %36 = arith.index_cast %arg5 : i32 to index
      %c0_29 = arith.constant 0 : index
      %c3 = arith.constant 3 : index
      %c0_30 = arith.constant 0 : index
      %37 = vector.load %arg4[%36, %c0_29, %c3, %c0_30] : memref<9x11x11x128xf32, #tpu.memory_space<vmem>>, vector<1x7x7x128xf32>
      %38 = vector.shape_cast %37 : vector<1x7x7x128xf32> to vector<7x7x128xf32>
      %39 = arith.index_cast %arg5 : i32 to index
      %c0_31 = arith.constant 0 : index
      %c3_32 = arith.constant 3 : index
      %c0_33 = arith.constant 0 : index
      %40 = vector.load %arg2[%39, %c0_31, %c3_32, %c0_33] : memref<9x5x5x128xf32, #tpu.memory_space<vmem>>, vector<1x1x1x128xf32>
      %41 = vector.shape_cast %40 : vector<1x1x1x128xf32> to vector<128xf32>
      %42 = vector.shape_cast %41 : vector<128xf32> to vector<1x1x128xf32>
      %43 = vector.broadcast %42 : vector<1x1x128xf32> to vector<7x7x128xf32>
      %44 = arith.mulf %38, %43 : vector<7x7x128xf32>
      %45 = arith.addf %35, %44 : vector<7x7x128xf32>
      %46 = arith.index_cast %arg5 : i32 to index
      %c0_34 = arith.constant 0 : index
      %c4 = arith.constant 4 : index
      %c0_35 = arith.constant 0 : index
      %47 = vector.load %arg4[%46, %c0_34, %c4, %c0_35] : memref<9x11x11x128xf32, #tpu.memory_space<vmem>>, vector<1x7x7x128xf32>
      %48 = vector.shape_cast %47 : vector<1x7x7x128xf32> to vector<7x7x128xf32>
      %49 = arith.index_cast %arg5 : i32 to index
      %c0_36 = arith.constant 0 : index
      %c4_37 = arith.constant 4 : index
      %c0_38 = arith.constant 0 : index
      %50 = vector.load %arg2[%49, %c0_36, %c4_37, %c0_38] : memref<9x5x5x128xf32, #tpu.memory_space<vmem>>, vector<1x1x1x128xf32>
      %51 = vector.shape_cast %50 : vector<1x1x1x128xf32> to vector<128xf32>
      %52 = vector.shape_cast %51 : vector<128xf32> to vector<1x1x128xf32>
      %53 = vector.broadcast %52 : vector<1x1x128xf32> to vector<7x7x128xf32>
      %54 = arith.mulf %48, %53 : vector<7x7x128xf32>
      %55 = arith.addf %45, %54 : vector<7x7x128xf32>
      %56 = arith.index_cast %arg5 : i32 to index
      %c1_39 = arith.constant 1 : index
      %c0_40 = arith.constant 0 : index
      %c0_41 = arith.constant 0 : index
      %57 = vector.load %arg4[%56, %c1_39, %c0_40, %c0_41] : memref<9x11x11x128xf32, #tpu.memory_space<vmem>>, vector<1x7x7x128xf32>
      %58 = vector.shape_cast %57 : vector<1x7x7x128xf32> to vector<7x7x128xf32>
      %59 = arith.index_cast %arg5 : i32 to index
      %c1_42 = arith.constant 1 : index
      %c0_43 = arith.constant 0 : index
      %c0_44 = arith.constant 0 : index
      %60 = vector.load %arg2[%59, %c1_42, %c0_43, %c0_44] : memref<9x5x5x128xf32, #tpu.memory_space<vmem>>, vector<1x1x1x128xf32>
      %61 = vector.shape_cast %60 : vector<1x1x1x128xf32> to vector<128xf32>
      %62 = vector.shape_cast %61 : vector<128xf32> to vector<1x1x128xf32>
      %63 = vector.broadcast %62 : vector<1x1x128xf32> to vector<7x7x128xf32>
      %64 = arith.mulf %58, %63 : vector<7x7x128xf32>
      %65 = arith.addf %55, %64 : vector<7x7x128xf32>
      %66 = arith.index_cast %arg5 : i32 to index
      %c1_45 = arith.constant 1 : index
      %c1_46 = arith.constant 1 : index
      %c0_47 = arith.constant 0 : index
      %67 = vector.load %arg4[%66, %c1_45, %c1_46, %c0_47] : memref<9x11x11x128xf32, #tpu.memory_space<vmem>>, vector<1x7x7x128xf32>
      %68 = vector.shape_cast %67 : vector<1x7x7x128xf32> to vector<7x7x128xf32>
      %69 = arith.index_cast %arg5 : i32 to index
      %c1_48 = arith.constant 1 : index
      %c1_49 = arith.constant 1 : index
      %c0_50 = arith.constant 0 : index
      %70 = vector.load %arg2[%69, %c1_48, %c1_49, %c0_50] : memref<9x5x5x128xf32, #tpu.memory_space<vmem>>, vector<1x1x1x128xf32>
      %71 = vector.shape_cast %70 : vector<1x1x1x128xf32> to vector<128xf32>
      %72 = vector.shape_cast %71 : vector<128xf32> to vector<1x1x128xf32>
      %73 = vector.broadcast %72 : vector<1x1x128xf32> to vector<7x7x128xf32>
      %74 = arith.mulf %68, %73 : vector<7x7x128xf32>
      %75 = arith.addf %65, %74 : vector<7x7x128xf32>
      %76 = arith.index_cast %arg5 : i32 to index
      %c1_51 = arith.constant 1 : index
      %c2_52 = arith.constant 2 : index
      %c0_53 = arith.constant 0 : index
      %77 = vector.load %arg4[%76, %c1_51, %c2_52, %c0_53] : memref<9x11x11x128xf32, #tpu.memory_space<vmem>>, vector<1x7x7x128xf32>
      %78 = vector.shape_cast %77 : vector<1x7x7x128xf32> to vector<7x7x128xf32>
      %79 = arith.index_cast %arg5 : i32 to index
      %c1_54 = arith.constant 1 : index
      %c2_55 = arith.constant 2 : index
      %c0_56 = arith.constant 0 : index
      %80 = vector.load %arg2[%79, %c1_54, %c2_55, %c0_56] : memref<9x5x5x128xf32, #tpu.memory_space<vmem>>, vector<1x1x1x128xf32>
      %81 = vector.shape_cast %80 : vector<1x1x1x128xf32> to vector<128xf32>
      %82 = vector.shape_cast %81 : vector<128xf32> to vector<1x1x128xf32>
      %83 = vector.broadcast %82 : vector<1x1x128xf32> to vector<7x7x128xf32>
      %84 = arith.mulf %78, %83 : vector<7x7x128xf32>
      %85 = arith.addf %75, %84 : vector<7x7x128xf32>
      %86 = arith.index_cast %arg5 : i32 to index
      %c1_57 = arith.constant 1 : index
      %c3_58 = arith.constant 3 : index
      %c0_59 = arith.constant 0 : index
      %87 = vector.load %arg4[%86, %c1_57, %c3_58, %c0_59] : memref<9x11x11x128xf32, #tpu.memory_space<vmem>>, vector<1x7x7x128xf32>
      %88 = vector.shape_cast %87 : vector<1x7x7x128xf32> to vector<7x7x128xf32>
      %89 = arith.index_cast %arg5 : i32 to index
      %c1_60 = arith.constant 1 : index
      %c3_61 = arith.constant 3 : index
      %c0_62 = arith.constant 0 : index
      %90 = vector.load %arg2[%89, %c1_60, %c3_61, %c0_62] : memref<9x5x5x128xf32, #tpu.memory_space<vmem>>, vector<1x1x1x128xf32>
      %91 = vector.shape_cast %90 : vector<1x1x1x128xf32> to vector<128xf32>
      %92 = vector.shape_cast %91 : vector<128xf32> to vector<1x1x128xf32>
      %93 = vector.broadcast %92 : vector<1x1x128xf32> to vector<7x7x128xf32>
      %94 = arith.mulf %88, %93 : vector<7x7x128xf32>
      %95 = arith.addf %85, %94 : vector<7x7x128xf32>
      %96 = arith.index_cast %arg5 : i32 to index
      %c1_63 = arith.constant 1 : index
      %c4_64 = arith.constant 4 : index
      %c0_65 = arith.constant 0 : index
      %97 = vector.load %arg4[%96, %c1_63, %c4_64, %c0_65] : memref<9x11x11x128xf32, #tpu.memory_space<vmem>>, vector<1x7x7x128xf32>
      %98 = vector.shape_cast %97 : vector<1x7x7x128xf32> to vector<7x7x128xf32>
      %99 = arith.index_cast %arg5 : i32 to index
      %c1_66 = arith.constant 1 : index
      %c4_67 = arith.constant 4 : index
      %c0_68 = arith.constant 0 : index
      %100 = vector.load %arg2[%99, %c1_66, %c4_67, %c0_68] : memref<9x5x5x128xf32, #tpu.memory_space<vmem>>, vector<1x1x1x128xf32>
      %101 = vector.shape_cast %100 : vector<1x1x1x128xf32> to vector<128xf32>
      %102 = vector.shape_cast %101 : vector<128xf32> to vector<1x1x128xf32>
      %103 = vector.broadcast %102 : vector<1x1x128xf32> to vector<7x7x128xf32>
      %104 = arith.mulf %98, %103 : vector<7x7x128xf32>
      %105 = arith.addf %95, %104 : vector<7x7x128xf32>
      %106 = arith.index_cast %arg5 : i32 to index
      %c2_69 = arith.constant 2 : index
      %c0_70 = arith.constant 0 : index
      %c0_71 = arith.constant 0 : index
      %107 = vector.load %arg4[%106, %c2_69, %c0_70, %c0_71] : memref<9x11x11x128xf32, #tpu.memory_space<vmem>>, vector<1x7x7x128xf32>
      %108 = vector.shape_cast %107 : vector<1x7x7x128xf32> to vector<7x7x128xf32>
      %109 = arith.index_cast %arg5 : i32 to index
      %c2_72 = arith.constant 2 : index
      %c0_73 = arith.constant 0 : index
      %c0_74 = arith.constant 0 : index
      %110 = vector.load %arg2[%109, %c2_72, %c0_73, %c0_74] : memref<9x5x5x128xf32, #tpu.memory_space<vmem>>, vector<1x1x1x128xf32>
      %111 = vector.shape_cast %110 : vector<1x1x1x128xf32> to vector<128xf32>
      %112 = vector.shape_cast %111 : vector<128xf32> to vector<1x1x128xf32>
      %113 = vector.broadcast %112 : vector<1x1x128xf32> to vector<7x7x128xf32>
      %114 = arith.mulf %108, %113 : vector<7x7x128xf32>
      %115 = arith.addf %105, %114 : vector<7x7x128xf32>
      %116 = arith.index_cast %arg5 : i32 to index
      %c2_75 = arith.constant 2 : index
      %c1_76 = arith.constant 1 : index
      %c0_77 = arith.constant 0 : index
      %117 = vector.load %arg4[%116, %c2_75, %c1_76, %c0_77] : memref<9x11x11x128xf32, #tpu.memory_space<vmem>>, vector<1x7x7x128xf32>
      %118 = vector.shape_cast %117 : vector<1x7x7x128xf32> to vector<7x7x128xf32>
      %119 = arith.index_cast %arg5 : i32 to index
      %c2_78 = arith.constant 2 : index
      %c1_79 = arith.constant 1 : index
      %c0_80 = arith.constant 0 : index
      %120 = vector.load %arg2[%119, %c2_78, %c1_79, %c0_80] : memref<9x5x5x128xf32, #tpu.memory_space<vmem>>, vector<1x1x1x128xf32>
      %121 = vector.shape_cast %120 : vector<1x1x1x128xf32> to vector<128xf32>
      %122 = vector.shape_cast %121 : vector<128xf32> to vector<1x1x128xf32>
      %123 = vector.broadcast %122 : vector<1x1x128xf32> to vector<7x7x128xf32>
      %124 = arith.mulf %118, %123 : vector<7x7x128xf32>
      %125 = arith.addf %115, %124 : vector<7x7x128xf32>
      %126 = arith.index_cast %arg5 : i32 to index
      %c2_81 = arith.constant 2 : index
      %c2_82 = arith.constant 2 : index
      %c0_83 = arith.constant 0 : index
      %127 = vector.load %arg4[%126, %c2_81, %c2_82, %c0_83] : memref<9x11x11x128xf32, #tpu.memory_space<vmem>>, vector<1x7x7x128xf32>
      %128 = vector.shape_cast %127 : vector<1x7x7x128xf32> to vector<7x7x128xf32>
      %129 = arith.index_cast %arg5 : i32 to index
      %c2_84 = arith.constant 2 : index
      %c2_85 = arith.constant 2 : index
      %c0_86 = arith.constant 0 : index
      %130 = vector.load %arg2[%129, %c2_84, %c2_85, %c0_86] : memref<9x5x5x128xf32, #tpu.memory_space<vmem>>, vector<1x1x1x128xf32>
      %131 = vector.shape_cast %130 : vector<1x1x1x128xf32> to vector<128xf32>
      %132 = vector.shape_cast %131 : vector<128xf32> to vector<1x1x128xf32>
      %133 = vector.broadcast %132 : vector<1x1x128xf32> to vector<7x7x128xf32>
      %134 = arith.mulf %128, %133 : vector<7x7x128xf32>
      %135 = arith.addf %125, %134 : vector<7x7x128xf32>
      %136 = arith.index_cast %arg5 : i32 to index
      %c2_87 = arith.constant 2 : index
      %c3_88 = arith.constant 3 : index
      %c0_89 = arith.constant 0 : index
      %137 = vector.load %arg4[%136, %c2_87, %c3_88, %c0_89] : memref<9x11x11x128xf32, #tpu.memory_space<vmem>>, vector<1x7x7x128xf32>
      %138 = vector.shape_cast %137 : vector<1x7x7x128xf32> to vector<7x7x128xf32>
      %139 = arith.index_cast %arg5 : i32 to index
      %c2_90 = arith.constant 2 : index
      %c3_91 = arith.constant 3 : index
      %c0_92 = arith.constant 0 : index
      %140 = vector.load %arg2[%139, %c2_90, %c3_91, %c0_92] : memref<9x5x5x128xf32, #tpu.memory_space<vmem>>, vector<1x1x1x128xf32>
      %141 = vector.shape_cast %140 : vector<1x1x1x128xf32> to vector<128xf32>
      %142 = vector.shape_cast %141 : vector<128xf32> to vector<1x1x128xf32>
      %143 = vector.broadcast %142 : vector<1x1x128xf32> to vector<7x7x128xf32>
      %144 = arith.mulf %138, %143 : vector<7x7x128xf32>
      %145 = arith.addf %135, %144 : vector<7x7x128xf32>
      %146 = arith.index_cast %arg5 : i32 to index
      %c2_93 = arith.constant 2 : index
      %c4_94 = arith.constant 4 : index
      %c0_95 = arith.constant 0 : index
      %147 = vector.load %arg4[%146, %c2_93, %c4_94, %c0_95] : memref<9x11x11x128xf32, #tpu.memory_space<vmem>>, vector<1x7x7x128xf32>
      %148 = vector.shape_cast %147 : vector<1x7x7x128xf32> to vector<7x7x128xf32>
      %149 = arith.index_cast %arg5 : i32 to index
      %c2_96 = arith.constant 2 : index
      %c4_97 = arith.constant 4 : index
      %c0_98 = arith.constant 0 : index
      %150 = vector.load %arg2[%149, %c2_96, %c4_97, %c0_98] : memref<9x5x5x128xf32, #tpu.memory_space<vmem>>, vector<1x1x1x128xf32>
      %151 = vector.shape_cast %150 : vector<1x1x1x128xf32> to vector<128xf32>
      %152 = vector.shape_cast %151 : vector<128xf32> to vector<1x1x128xf32>
      %153 = vector.broadcast %152 : vector<1x1x128xf32> to vector<7x7x128xf32>
      %154 = arith.mulf %148, %153 : vector<7x7x128xf32>
      %155 = arith.addf %145, %154 : vector<7x7x128xf32>
      %156 = arith.index_cast %arg5 : i32 to index
      %c3_99 = arith.constant 3 : index
      %c0_100 = arith.constant 0 : index
      %c0_101 = arith.constant 0 : index
      %157 = vector.load %arg4[%156, %c3_99, %c0_100, %c0_101] : memref<9x11x11x128xf32, #tpu.memory_space<vmem>>, vector<1x7x7x128xf32>
      %158 = vector.shape_cast %157 : vector<1x7x7x128xf32> to vector<7x7x128xf32>
      %159 = arith.index_cast %arg5 : i32 to index
      %c3_102 = arith.constant 3 : index
      %c0_103 = arith.constant 0 : index
      %c0_104 = arith.constant 0 : index
      %160 = vector.load %arg2[%159, %c3_102, %c0_103, %c0_104] : memref<9x5x5x128xf32, #tpu.memory_space<vmem>>, vector<1x1x1x128xf32>
      %161 = vector.shape_cast %160 : vector<1x1x1x128xf32> to vector<128xf32>
      %162 = vector.shape_cast %161 : vector<128xf32> to vector<1x1x128xf32>
      %163 = vector.broadcast %162 : vector<1x1x128xf32> to vector<7x7x128xf32>
      %164 = arith.mulf %158, %163 : vector<7x7x128xf32>
      %165 = arith.addf %155, %164 : vector<7x7x128xf32>
      %166 = arith.index_cast %arg5 : i32 to index
      %c3_105 = arith.constant 3 : index
      %c1_106 = arith.constant 1 : index
      %c0_107 = arith.constant 0 : index
      %167 = vector.load %arg4[%166, %c3_105, %c1_106, %c0_107] : memref<9x11x11x128xf32, #tpu.memory_space<vmem>>, vector<1x7x7x128xf32>
      %168 = vector.shape_cast %167 : vector<1x7x7x128xf32> to vector<7x7x128xf32>
      %169 = arith.index_cast %arg5 : i32 to index
      %c3_108 = arith.constant 3 : index
      %c1_109 = arith.constant 1 : index
      %c0_110 = arith.constant 0 : index
      %170 = vector.load %arg2[%169, %c3_108, %c1_109, %c0_110] : memref<9x5x5x128xf32, #tpu.memory_space<vmem>>, vector<1x1x1x128xf32>
      %171 = vector.shape_cast %170 : vector<1x1x1x128xf32> to vector<128xf32>
      %172 = vector.shape_cast %171 : vector<128xf32> to vector<1x1x128xf32>
      %173 = vector.broadcast %172 : vector<1x1x128xf32> to vector<7x7x128xf32>
      %174 = arith.mulf %168, %173 : vector<7x7x128xf32>
      %175 = arith.addf %165, %174 : vector<7x7x128xf32>
      %176 = arith.index_cast %arg5 : i32 to index
      %c3_111 = arith.constant 3 : index
      %c2_112 = arith.constant 2 : index
      %c0_113 = arith.constant 0 : index
      %177 = vector.load %arg4[%176, %c3_111, %c2_112, %c0_113] : memref<9x11x11x128xf32, #tpu.memory_space<vmem>>, vector<1x7x7x128xf32>
      %178 = vector.shape_cast %177 : vector<1x7x7x128xf32> to vector<7x7x128xf32>
      %179 = arith.index_cast %arg5 : i32 to index
      %c3_114 = arith.constant 3 : index
      %c2_115 = arith.constant 2 : index
      %c0_116 = arith.constant 0 : index
      %180 = vector.load %arg2[%179, %c3_114, %c2_115, %c0_116] : memref<9x5x5x128xf32, #tpu.memory_space<vmem>>, vector<1x1x1x128xf32>
      %181 = vector.shape_cast %180 : vector<1x1x1x128xf32> to vector<128xf32>
      %182 = vector.shape_cast %181 : vector<128xf32> to vector<1x1x128xf32>
      %183 = vector.broadcast %182 : vector<1x1x128xf32> to vector<7x7x128xf32>
      %184 = arith.mulf %178, %183 : vector<7x7x128xf32>
      %185 = arith.addf %175, %184 : vector<7x7x128xf32>
      %186 = arith.index_cast %arg5 : i32 to index
      %c3_117 = arith.constant 3 : index
      %c3_118 = arith.constant 3 : index
      %c0_119 = arith.constant 0 : index
      %187 = vector.load %arg4[%186, %c3_117, %c3_118, %c0_119] : memref<9x11x11x128xf32, #tpu.memory_space<vmem>>, vector<1x7x7x128xf32>
      %188 = vector.shape_cast %187 : vector<1x7x7x128xf32> to vector<7x7x128xf32>
      %189 = arith.index_cast %arg5 : i32 to index
      %c3_120 = arith.constant 3 : index
      %c3_121 = arith.constant 3 : index
      %c0_122 = arith.constant 0 : index
      %190 = vector.load %arg2[%189, %c3_120, %c3_121, %c0_122] : memref<9x5x5x128xf32, #tpu.memory_space<vmem>>, vector<1x1x1x128xf32>
      %191 = vector.shape_cast %190 : vector<1x1x1x128xf32> to vector<128xf32>
      %192 = vector.shape_cast %191 : vector<128xf32> to vector<1x1x128xf32>
      %193 = vector.broadcast %192 : vector<1x1x128xf32> to vector<7x7x128xf32>
      %194 = arith.mulf %188, %193 : vector<7x7x128xf32>
      %195 = arith.addf %185, %194 : vector<7x7x128xf32>
      %196 = arith.index_cast %arg5 : i32 to index
      %c3_123 = arith.constant 3 : index
      %c4_124 = arith.constant 4 : index
      %c0_125 = arith.constant 0 : index
      %197 = vector.load %arg4[%196, %c3_123, %c4_124, %c0_125] : memref<9x11x11x128xf32, #tpu.memory_space<vmem>>, vector<1x7x7x128xf32>
      %198 = vector.shape_cast %197 : vector<1x7x7x128xf32> to vector<7x7x128xf32>
      %199 = arith.index_cast %arg5 : i32 to index
      %c3_126 = arith.constant 3 : index
      %c4_127 = arith.constant 4 : index
      %c0_128 = arith.constant 0 : index
      %200 = vector.load %arg2[%199, %c3_126, %c4_127, %c0_128] : memref<9x5x5x128xf32, #tpu.memory_space<vmem>>, vector<1x1x1x128xf32>
      %201 = vector.shape_cast %200 : vector<1x1x1x128xf32> to vector<128xf32>
      %202 = vector.shape_cast %201 : vector<128xf32> to vector<1x1x128xf32>
      %203 = vector.broadcast %202 : vector<1x1x128xf32> to vector<7x7x128xf32>
      %204 = arith.mulf %198, %203 : vector<7x7x128xf32>
      %205 = arith.addf %195, %204 : vector<7x7x128xf32>
      %206 = arith.index_cast %arg5 : i32 to index
      %c4_129 = arith.constant 4 : index
      %c0_130 = arith.constant 0 : index
      %c0_131 = arith.constant 0 : index
      %207 = vector.load %arg4[%206, %c4_129, %c0_130, %c0_131] : memref<9x11x11x128xf32, #tpu.memory_space<vmem>>, vector<1x7x7x128xf32>
      %208 = vector.shape_cast %207 : vector<1x7x7x128xf32> to vector<7x7x128xf32>
      %209 = arith.index_cast %arg5 : i32 to index
      %c4_132 = arith.constant 4 : index
      %c0_133 = arith.constant 0 : index
      %c0_134 = arith.constant 0 : index
      %210 = vector.load %arg2[%209, %c4_132, %c0_133, %c0_134] : memref<9x5x5x128xf32, #tpu.memory_space<vmem>>, vector<1x1x1x128xf32>
      %211 = vector.shape_cast %210 : vector<1x1x1x128xf32> to vector<128xf32>
      %212 = vector.shape_cast %211 : vector<128xf32> to vector<1x1x128xf32>
      %213 = vector.broadcast %212 : vector<1x1x128xf32> to vector<7x7x128xf32>
      %214 = arith.mulf %208, %213 : vector<7x7x128xf32>
      %215 = arith.addf %205, %214 : vector<7x7x128xf32>
      %216 = arith.index_cast %arg5 : i32 to index
      %c4_135 = arith.constant 4 : index
      %c1_136 = arith.constant 1 : index
      %c0_137 = arith.constant 0 : index
      %217 = vector.load %arg4[%216, %c4_135, %c1_136, %c0_137] : memref<9x11x11x128xf32, #tpu.memory_space<vmem>>, vector<1x7x7x128xf32>
      %218 = vector.shape_cast %217 : vector<1x7x7x128xf32> to vector<7x7x128xf32>
      %219 = arith.index_cast %arg5 : i32 to index
      %c4_138 = arith.constant 4 : index
      %c1_139 = arith.constant 1 : index
      %c0_140 = arith.constant 0 : index
      %220 = vector.load %arg2[%219, %c4_138, %c1_139, %c0_140] : memref<9x5x5x128xf32, #tpu.memory_space<vmem>>, vector<1x1x1x128xf32>
      %221 = vector.shape_cast %220 : vector<1x1x1x128xf32> to vector<128xf32>
      %222 = vector.shape_cast %221 : vector<128xf32> to vector<1x1x128xf32>
      %223 = vector.broadcast %222 : vector<1x1x128xf32> to vector<7x7x128xf32>
      %224 = arith.mulf %218, %223 : vector<7x7x128xf32>
      %225 = arith.addf %215, %224 : vector<7x7x128xf32>
      %226 = arith.index_cast %arg5 : i32 to index
      %c4_141 = arith.constant 4 : index
      %c2_142 = arith.constant 2 : index
      %c0_143 = arith.constant 0 : index
      %227 = vector.load %arg4[%226, %c4_141, %c2_142, %c0_143] : memref<9x11x11x128xf32, #tpu.memory_space<vmem>>, vector<1x7x7x128xf32>
      %228 = vector.shape_cast %227 : vector<1x7x7x128xf32> to vector<7x7x128xf32>
      %229 = arith.index_cast %arg5 : i32 to index
      %c4_144 = arith.constant 4 : index
      %c2_145 = arith.constant 2 : index
      %c0_146 = arith.constant 0 : index
      %230 = vector.load %arg2[%229, %c4_144, %c2_145, %c0_146] : memref<9x5x5x128xf32, #tpu.memory_space<vmem>>, vector<1x1x1x128xf32>
      %231 = vector.shape_cast %230 : vector<1x1x1x128xf32> to vector<128xf32>
      %232 = vector.shape_cast %231 : vector<128xf32> to vector<1x1x128xf32>
      %233 = vector.broadcast %232 : vector<1x1x128xf32> to vector<7x7x128xf32>
      %234 = arith.mulf %228, %233 : vector<7x7x128xf32>
      %235 = arith.addf %225, %234 : vector<7x7x128xf32>
      %236 = arith.index_cast %arg5 : i32 to index
      %c4_147 = arith.constant 4 : index
      %c3_148 = arith.constant 3 : index
      %c0_149 = arith.constant 0 : index
      %237 = vector.load %arg4[%236, %c4_147, %c3_148, %c0_149] : memref<9x11x11x128xf32, #tpu.memory_space<vmem>>, vector<1x7x7x128xf32>
      %238 = vector.shape_cast %237 : vector<1x7x7x128xf32> to vector<7x7x128xf32>
      %239 = arith.index_cast %arg5 : i32 to index
      %c4_150 = arith.constant 4 : index
      %c3_151 = arith.constant 3 : index
      %c0_152 = arith.constant 0 : index
      %240 = vector.load %arg2[%239, %c4_150, %c3_151, %c0_152] : memref<9x5x5x128xf32, #tpu.memory_space<vmem>>, vector<1x1x1x128xf32>
      %241 = vector.shape_cast %240 : vector<1x1x1x128xf32> to vector<128xf32>
      %242 = vector.shape_cast %241 : vector<128xf32> to vector<1x1x128xf32>
      %243 = vector.broadcast %242 : vector<1x1x128xf32> to vector<7x7x128xf32>
      %244 = arith.mulf %238, %243 : vector<7x7x128xf32>
      %245 = arith.addf %235, %244 : vector<7x7x128xf32>
      %246 = arith.index_cast %arg5 : i32 to index
      %c4_153 = arith.constant 4 : index
      %c4_154 = arith.constant 4 : index
      %c0_155 = arith.constant 0 : index
      %247 = vector.load %arg4[%246, %c4_153, %c4_154, %c0_155] : memref<9x11x11x128xf32, #tpu.memory_space<vmem>>, vector<1x7x7x128xf32>
      %248 = vector.shape_cast %247 : vector<1x7x7x128xf32> to vector<7x7x128xf32>
      %249 = arith.index_cast %arg5 : i32 to index
      %c4_156 = arith.constant 4 : index
      %c4_157 = arith.constant 4 : index
      %c0_158 = arith.constant 0 : index
      %250 = vector.load %arg2[%249, %c4_156, %c4_157, %c0_158] : memref<9x5x5x128xf32, #tpu.memory_space<vmem>>, vector<1x1x1x128xf32>
      %251 = vector.shape_cast %250 : vector<1x1x1x128xf32> to vector<128xf32>
      %252 = vector.shape_cast %251 : vector<128xf32> to vector<1x1x128xf32>
      %253 = vector.broadcast %252 : vector<1x1x128xf32> to vector<7x7x128xf32>
      %254 = arith.mulf %248, %253 : vector<7x7x128xf32>
      %255 = arith.addf %245, %254 : vector<7x7x128xf32>
      %256 = arith.index_cast %arg5 : i32 to index
      %c0_159 = arith.constant 0 : index
      %c0_160 = arith.constant 0 : index
      %c0_161 = arith.constant 0 : index
      %257 = vector.load %arg3[%256, %c0_159, %c0_160, %c0_161] : memref<9x7x7x128xf32, #tpu.memory_space<vmem>>, vector<1x7x7x128xf32>
      %258 = vector.shape_cast %257 : vector<1x7x7x128xf32> to vector<7x7x128xf32>
      %259 = vector.shape_cast %255 : vector<7x7x128xf32> to vector<1x7x7x128xf32>
      tpu.vector_store %arg3[%256, %c0_159, %c0_160, %c0_161], %259 {strides = array<i32>} : memref<9x7x7x128xf32, #tpu.memory_space<vmem>>, vector<1x7x7x128xf32>,
    }
    %c9_i32_10 = arith.constant 9 : i32
    return
  }
  func.func @transform_0(%arg0: i32) -> (i32, i32, i32, i32) {
    %c0_i32 = arith.constant 0 : i32
    %c0_i32_0 = arith.constant 0 : i32
    %c0_i32_1 = arith.constant 0 : i32
    %c0_i32_2 = arith.constant 0 : i32
    return %arg0, %c0_i32, %c0_i32_0, %c0_i32_1 : i32, i32, i32, i32
  }
  func.func @transform_1(%arg0: i32) -> (i32, i32, i32, i32) {
    %c0_i32 = arith.constant 0 : i32
    %c0_i32_0 = arith.constant 0 : i32
    %c0_i32_1 = arith.constant 0 : i32
    %c0_i32_2 = arith.constant 0 : i32
    return %arg0, %c0_i32, %c0_i32_0, %c0_i32_1 : i32, i32, i32, i32
  }
  func.func @transform_2(%arg0: i32) -> (i32, i32, i32, i32) {
    %c0_i32 = arith.constant 0 : i32
    %c0_i32_0 = arith.constant 0 : i32
    %c0_i32_1 = arith.constant 0 : i32
    %c0_i32_2 = arith.constant 0 : i32
    return %arg0, %c0_i32, %c0_i32_0, %c0_i32_1 : i32, i32, i32, i32
  }
}

</mosaic_0001>

<bundles_post_ra>
// kernel: tpu_custom_call.1
= control target key start
LH: loop header
LB: loop body
LE: loop exit
PB: predicated region body
PF: predicated region fallthrough
CT: control target
= control target key end

     0   :  { %7 = vsyncpa [#allocation4], 0  ;;  %s1830_s0 = inlined_call_operand.hbm [shape: f32[9,7,7,128], index: 0, kind: input, shape index: {}]   ;;  %s1831_s1 = inlined_call_operand.hbm [shape: f32[9,5,5,128], index: 1, kind: input, shape index: {}]   ;;  %s1832_s2 = inlined_call_operand.hbm [shape: f32[9,7,7,128], index: 2, kind: output, shape index: {}]  }
   0x1   :  { %8 = vsyncpa [#allocation7], 0 }
   0x2   :  { %9 = vsyncpa [#allocation5], 0  ;;  %s1376_s9 = smov [#allocation3]  }
   0x3   :  { %s15_s10 = sshll.u32 %s1376_s9, 4  ;;  %s16_s10 = int_to_ptr.vmem [resolvable:$true] %s15_s10 }
   0x4   :  { %s1310_s11 = scalar_lea.vmem %s16_s10, 8064  ;;  %p1315_p1 = scmp.lt.s32.totalorder %s16_s10, %s16_s10 }
   0x5   :  { %p1311_p0 = scmp.ne.s32.totalorder %s16_s10, %s1310_s11  ;;  %p1316_p2 = scmp.lt.s32.totalorder %s1310_s11, %s1310_s11 }
   0x7   :  { %p1317_p3 = por %p1316_p2, %p1315_p1 }
   0x9   :  { %p1318_p4 = pnand %p1317_p3, %p1311_p0 }
   0xb   :  { %1321 = shalt.err (!%p1318_p4)
}
   0xc   :  { %s1377_s12 = smov 128   ;;  %s1378_s13 = smov 8  }
   0xd   :  { %21 = dma.hbm_to_vmem [thread:$0]  %s1830_s0, 8064, %s16_s10, [#allocation4], %s1377_s12, %s1377_s12, %s1378_s13  }
   0xe   :  { %s1379_s16 = smov [#allocation6]  }
   0xf   :  { %s27_s17 = sshll.u32 %s1379_s16, 4  ;;  %s28_s17 = int_to_ptr.vmem [resolvable:$true] %s27_s17 }
  0x10   :  { %s1330_s18 = scalar_lea.vmem %s28_s17, 5760  ;;  %p1335_p6 = scmp.lt.s32.totalorder %s28_s17, %s28_s17 }
  0x11   :  { %p1331_p5 = scmp.ne.s32.totalorder %s28_s17, %s1330_s18  ;;  %p1336_p7 = scmp.lt.s32.totalorder %s1330_s18, %s1330_s18 }
  0x13   :  { %p1337_p8 = por %p1336_p7, %p1335_p6 }
  0x15   :  { %p1338_p9 = pnand %p1337_p8, %p1331_p5 }
  0x17   :  { %1341 = shalt.err (!%p1338_p9)
}
  0x18   :  { %33 = dma.hbm_to_vmem [thread:$0]  %s1831_s1, 5760, %s28_s17, [#allocation7], %s1377_s12, %s1377_s12, %s1378_s13  }
  0x19   :  { %1366 = dma.done.wait [#allocation4], 8064  }
  0x1a   :  { %1367 = vsyncadd [#allocation4], 4294959232 }
  0x1b   :  { %1368 = dma.done.wait [#allocation7], 5760  }
  0x1c   :  { %1369 = vsyncadd [#allocation7], 4294961536  ;;  %v1380_v0 = vmov 0.0   ;;  %v238_v1 = vld [vmem:[#allocation3] sm:$0x7f]  ;;  %s1607_s0 = smov 0  }
  0x1d   :  { %44 = vst [vmem:[#allocation2 + $0x20] sm:$0xff] %v1380_v0  ;;  %40 = vst [vmem:[#allocation2] sm:$0xff] %v1380_v0  ;;  %v239_v2 = vld [vmem:[#allocation3 + $0x8] sm:$0x7f]  ;;  %v240_v3 = vld [vmem:[#allocation3 + $0x10] sm:$0x7f] }
  0x1e   :  { %41 = vst [vmem:[#allocation2 + $0x8] sm:$0x7] %v1380_v0  ;;  %42 = vst [vmem:[#allocation2 + $0x10] sm:$0xff] %v1380_v0  ;;  %v241_v4 = vld [vmem:[#allocation3 + $0x18] sm:$0x7f] }
  0x1f   :  { %43 = vst [vmem:[#allocation2 + $0x18] sm:$0x7] %v1380_v0  ;;  %45 = vst [vmem:[#allocation2 + $0x28] sm:$0x7] %v1380_v0  ;;  %v242_v5 = vld [vmem:[#allocation3 + $0x20] sm:$0x7f] }
  0x20   :  { %46 = vst [vmem:[#allocation2 + $0x30] sm:$0xff] %v1380_v0  ;;  %47 = vst [vmem:[#allocation2 + $0x38] sm:$0x7] %v1380_v0  ;;  %v243_v6 = vld [vmem:[#allocation3 + $0x28] sm:$0x7f] }
  0x21   :  { %48 = vst [vmem:[#allocation2 + $0x40] sm:$0xff] %v1380_v0  ;;  %49 = vst [vmem:[#allocation2 + $0x48] sm:$0x7] %v1380_v0  ;;  %v244_v7 = vld [vmem:[#allocation3 + $0x30] sm:$0x7f] }
  0x22   :  { %50 = vst [vmem:[#allocation2 + $0x50] sm:$0xff] %v1380_v0  ;;  %51 = vst [vmem:[#allocation2 + $0x58] sm:$0x7] %v1380_v0  ;;  %v245_v8 = vld [vmem:[#allocation3 + $0x38] sm:$0x7f] }
  0x23   :  { %52 = vst [vmem:[#allocation2 + $0x60] sm:$0xff] %v1380_v0  ;;  %53 = vst [vmem:[#allocation2 + $0x68] sm:$0x7] %v1380_v0  ;;  %v246_v9 = vld [vmem:[#allocation3 + $0x40] sm:$0x7f] }
  0x24   :  { %54 = vst [vmem:[#allocation2 + $0x70] sm:$0xff] %v1380_v0  ;;  %55 = vst [vmem:[#allocation2 + $0x78] sm:$0x7] %v1380_v0  ;;  %v247_v10 = vld [vmem:[#allocation3 + $0x48] sm:$0x7f] }
  0x25   :  { %56 = vst [vmem:[#allocation2 + $0x80] sm:$0xff] %v1380_v0  ;;  %57 = vst [vmem:[#allocation2 + $0x88] sm:$0x7] %v1380_v0  ;;  %v248_v11 = vld [vmem:[#allocation3 + $0x50] sm:$0x7f] }
  0x26   :  { %58 = vst [vmem:[#allocation2 + $0x90] sm:$0xff] %v1380_v0  ;;  %59 = vst [vmem:[#allocation2 + $0x98] sm:$0x7] %v1380_v0  ;;  %v249_v12 = vld [vmem:[#allocation3 + $0x58] sm:$0x7f] }
  0x27   :  { %60 = vst [vmem:[#allocation2 + $0xa0] sm:$0xff] %v1380_v0  ;;  %61 = vst [vmem:[#allocation2 + $0xa8] sm:$0x7] %v1380_v0  ;;  %v250_v13 = vld [vmem:[#allocation3 + $0x60] sm:$0x7f] }
  0x28   :  { %62 = vst [vmem:[#allocation2 + $0xb0] sm:$0xff] %v1380_v0  ;;  %63 = vst [vmem:[#allocation2 + $0xb8] sm:$0x7] %v1380_v0  ;;  %v251_v14 = vld [vmem:[#allocation3 + $0x68] sm:$0x7f] }
  0x29   :  { %64 = vst [vmem:[#allocation2 + $0xc0] sm:$0xff] %v1380_v0  ;;  %65 = vst [vmem:[#allocation2 + $0xc8] sm:$0x7] %v1380_v0  ;;  %v252_v15 = vld [vmem:[#allocation3 + $0x70] sm:$0x7f] }
  0x2a   :  { %66 = vst [vmem:[#allocation2 + $0xd0] sm:$0xff] %v1380_v0  ;;  %67 = vst [vmem:[#allocation2 + $0xd8] sm:$0x7] %v1380_v0  ;;  %v253_v16 = vld [vmem:[#allocation3 + $0x78] sm:$0x7f] }
  0x2b   :  { %68 = vst [vmem:[#allocation2 + $0xe0] sm:$0xff] %v1380_v0  ;;  %69 = vst [vmem:[#allocation2 + $0xe8] sm:$0x7] %v1380_v0  ;;  %v254_v17 = vld [vmem:[#allocation3 + $0x80] sm:$0x7f] }
  0x2c   :  { %70 = vst [vmem:[#allocation2 + $0xf0] sm:$0xff] %v1380_v0  ;;  %71 = vst [vmem:[#allocation2 + $0xf8] sm:$0x7] %v1380_v0  ;;  %v255_v18 = vld [vmem:[#allocation3 + $0x88] sm:$0x7f] }
  0x2d   :  { %72 = vst [vmem:[#allocation2 + $0x100] sm:$0xff] %v1380_v0  ;;  %73 = vst [vmem:[#allocation2 + $0x108] sm:$0x7] %v1380_v0  ;;  %v256_v19 = vld [vmem:[#allocation3 + $0x90] sm:$0x7f] }
  0x2e   :  { %74 = vst [vmem:[#allocation2 + $0x110] sm:$0xff] %v1380_v0  ;;  %75 = vst [vmem:[#allocation2 + $0x118] sm:$0x7] %v1380_v0  ;;  %v257_v20 = vld [vmem:[#allocation3 + $0x98] sm:$0x7f] }
  0x2f   :  { %76 = vst [vmem:[#allocation2 + $0x120] sm:$0xff] %v1380_v0  ;;  %77 = vst [vmem:[#allocation2 + $0x128] sm:$0x7] %v1380_v0  ;;  %v258_v21 = vld [vmem:[#allocation3 + $0xa0] sm:$0x7f] }
  0x30   :  { %78 = vst [vmem:[#allocation2 + $0x130] sm:$0xff] %v1380_v0  ;;  %79 = vst [vmem:[#allocation2 + $0x138] sm:$0x7] %v1380_v0  ;;  %v259_v22 = vld [vmem:[#allocation3 + $0xa8] sm:$0x7f] }
  0x31   :  { %80 = vst [vmem:[#allocation2 + $0x140] sm:$0xff] %v1380_v0  ;;  %81 = vst [vmem:[#allocation2 + $0x148] sm:$0x7] %v1380_v0  ;;  %v260_v23 = vld [vmem:[#allocation3 + $0xb0] sm:$0x7f] }
  0x32   :  { %82 = vst [vmem:[#allocation2 + $0x150] sm:$0xff] %v1380_v0  ;;  %83 = vst [vmem:[#allocation2 + $0x158] sm:$0x7] %v1380_v0  ;;  %v261_v24 = vld [vmem:[#allocation3 + $0xb8] sm:$0x7f] }
  0x33   :  { %84 = vst [vmem:[#allocation2 + $0x160] sm:$0xff] %v1380_v0  ;;  %85 = vst [vmem:[#allocation2 + $0x168] sm:$0x7] %v1380_v0  ;;  %v262_v25 = vld [vmem:[#allocation3 + $0xc0] sm:$0x7f] }
  0x34   :  { %86 = vst [vmem:[#allocation2 + $0x170] sm:$0xff] %v1380_v0  ;;  %87 = vst [vmem:[#allocation2 + $0x178] sm:$0x7] %v1380_v0  ;;  %v263_v26 = vld [vmem:[#allocation3 + $0xc8] sm:$0x7f] }
  0x35   :  { %88 = vst [vmem:[#allocation2 + $0x180] sm:$0xff] %v1380_v0  ;;  %89 = vst [vmem:[#allocation2 + $0x188] sm:$0x7] %v1380_v0  ;;  %v264_v27 = vld [vmem:[#allocation3 + $0xd0] sm:$0x7f] }
  0x36   :  { %90 = vst [vmem:[#allocation2 + $0x190] sm:$0xff] %v1380_v0  ;;  %91 = vst [vmem:[#allocation2 + $0x198] sm:$0x7] %v1380_v0  ;;  %v265_v28 = vld [vmem:[#allocation3 + $0xd8] sm:$0x7f] }
  0x37   :  { %92 = vst [vmem:[#allocation2 + $0x1a0] sm:$0xff] %v1380_v0  ;;  %93 = vst [vmem:[#allocation2 + $0x1a8] sm:$0x7] %v1380_v0  ;;  %v266_v29 = vld [vmem:[#allocation3 + $0xe0] sm:$0x7f] }
  0x38   :  { %94 = vst [vmem:[#allocation2 + $0x1b0] sm:$0xff] %v1380_v0  ;;  %95 = vst [vmem:[#allocation2 + $0x1b8] sm:$0x7] %v1380_v0  ;;  %v267_v30 = vld [vmem:[#allocation3 + $0xe8] sm:$0x7f] }
  0x39   :  { %96 = vst [vmem:[#allocation2 + $0x1c0] sm:$0xff] %v1380_v0  ;;  %97 = vst [vmem:[#allocation2 + $0x1c8] sm:$0x7] %v1380_v0  ;;  %v268_v31 = vld [vmem:[#allocation3 + $0xf0] sm:$0x7f] }
  0x3a   :  { %98 = vst [vmem:[#allocation2 + $0x1d0] sm:$0xff] %v1380_v0  ;;  %99 = vst [vmem:[#allocation2 + $0x1d8] sm:$0x7] %v1380_v0  ;;  %v269_v32 = vld [vmem:[#allocation3 + $0xf8] sm:$0x7f] }
  0x3b   :  { %100 = vst [vmem:[#allocation2 + $0x1e0] sm:$0xff] %v1380_v0  ;;  %101 = vst [vmem:[#allocation2 + $0x1e8] sm:$0x7] %v1380_v0  ;;  %v270_v33 = vld [vmem:[#allocation3 + $0x100] sm:$0x7f] }
  0x3c   :  { %102 = vst [vmem:[#allocation2 + $0x1f0] sm:$0xff] %v1380_v0  ;;  %103 = vst [vmem:[#allocation2 + $0x1f8] sm:$0x7] %v1380_v0  ;;  %v271_v34 = vld [vmem:[#allocation3 + $0x108] sm:$0x7f] }
  0x3d   :  { %104 = vst [vmem:[#allocation2 + $0x200] sm:$0xff] %v1380_v0  ;;  %105 = vst [vmem:[#allocation2 + $0x208] sm:$0x7] %v1380_v0  ;;  %v272_v35 = vld [vmem:[#allocation3 + $0x110] sm:$0x7f] }
  0x3e   :  { %106 = vst [vmem:[#allocation2 + $0x210] sm:$0xff] %v1380_v0  ;;  %107 = vst [vmem:[#allocation2 + $0x218] sm:$0x7] %v1380_v0  ;;  %v273_v36 = vld [vmem:[#allocation3 + $0x118] sm:$0x7f] }
  0x3f   :  { %108 = vst [vmem:[#allocation2 + $0x220] sm:$0xff] %v1380_v0  ;;  %109 = vst [vmem:[#allocation2 + $0x228] sm:$0x7] %v1380_v0  ;;  %v274_v37 = vld [vmem:[#allocation3 + $0x120] sm:$0x7f] }
  0x40   :  { %110 = vst [vmem:[#allocation2 + $0x230] sm:$0xff] %v1380_v0  ;;  %111 = vst [vmem:[#allocation2 + $0x238] sm:$0x7] %v1380_v0  ;;  %v275_v38 = vld [vmem:[#allocation3 + $0x128] sm:$0x7f] }
  0x41   :  { %112 = vst [vmem:[#allocation2 + $0x240] sm:$0xff] %v1380_v0  ;;  %113 = vst [vmem:[#allocation2 + $0x248] sm:$0x7] %v1380_v0  ;;  %v276_v39 = vld [vmem:[#allocation3 + $0x130] sm:$0x7f] }
  0x42   :  { %114 = vst [vmem:[#allocation2 + $0x250] sm:$0xff] %v1380_v0  ;;  %115 = vst [vmem:[#allocation2 + $0x258] sm:$0x7] %v1380_v0  ;;  %v277_v40 = vld [vmem:[#allocation3 + $0x138] sm:$0x7f] }
  0x43   :  { %116 = vst [vmem:[#allocation2 + $0x260] sm:$0xff] %v1380_v0  ;;  %117 = vst [vmem:[#allocation2 + $0x268] sm:$0x7] %v1380_v0  ;;  %v278_v41 = vld [vmem:[#allocation3 + $0x140] sm:$0x7f] }
  0x44   :  { %118 = vst [vmem:[#allocation2 + $0x270] sm:$0xff] %v1380_v0  ;;  %119 = vst [vmem:[#allocation2 + $0x278] sm:$0x7] %v1380_v0  ;;  %v279_v42 = vld [vmem:[#allocation3 + $0x148] sm:$0x7f] }
  0x45   :  { %120 = vst [vmem:[#allocation2 + $0x280] sm:$0xff] %v1380_v0  ;;  %121 = vst [vmem:[#allocation2 + $0x288] sm:$0x7] %v1380_v0  ;;  %v280_v43 = vld [vmem:[#allocation3 + $0x150] sm:$0x7f] }
  0x46   :  { %122 = vst [vmem:[#allocation2 + $0x290] sm:$0xff] %v1380_v0  ;;  %123 = vst [vmem:[#allocation2 + $0x298] sm:$0x7] %v1380_v0  ;;  %v281_v44 = vld [vmem:[#allocation3 + $0x158] sm:$0x7f] }
  0x47   :  { %124 = vst [vmem:[#allocation2 + $0x2a0] sm:$0xff] %v1380_v0  ;;  %125 = vst [vmem:[#allocation2 + $0x2a8] sm:$0x7] %v1380_v0  ;;  %v282_v45 = vld [vmem:[#allocation3 + $0x160] sm:$0x7f] }
  0x48   :  { %126 = vst [vmem:[#allocation2 + $0x2b0] sm:$0xff] %v1380_v0  ;;  %127 = vst [vmem:[#allocation2 + $0x2b8] sm:$0x7] %v1380_v0  ;;  %v283_v46 = vld [vmem:[#allocation3 + $0x168] sm:$0x7f] }
  0x49   :  { %128 = vst [vmem:[#allocation2 + $0x2c0] sm:$0xff] %v1380_v0  ;;  %129 = vst [vmem:[#allocation2 + $0x2c8] sm:$0x7] %v1380_v0  ;;  %v284_v47 = vld [vmem:[#allocation3 + $0x170] sm:$0x7f] }
  0x4a   :  { %130 = vst [vmem:[#allocation2 + $0x2d0] sm:$0xff] %v1380_v0  ;;  %131 = vst [vmem:[#allocation2 + $0x2d8] sm:$0x7] %v1380_v0  ;;  %v285_v48 = vld [vmem:[#allocation3 + $0x178] sm:$0x7f] }
  0x4b   :  { %132 = vst [vmem:[#allocation2 + $0x2e0] sm:$0xff] %v1380_v0  ;;  %133 = vst [vmem:[#allocation2 + $0x2e8] sm:$0x7] %v1380_v0  ;;  %v286_v49 = vld [vmem:[#allocation3 + $0x180] sm:$0x7f] }
  0x4c   :  { %134 = vst [vmem:[#allocation2 + $0x2f0] sm:$0xff] %v1380_v0  ;;  %135 = vst [vmem:[#allocation2 + $0x2f8] sm:$0x7] %v1380_v0  ;;  %v287_v50 = vld [vmem:[#allocation3 + $0x188] sm:$0x7f] }
  0x4d   :  { %136 = vst [vmem:[#allocation2 + $0x300] sm:$0xff] %v1380_v0  ;;  %137 = vst [vmem:[#allocation2 + $0x308] sm:$0x7] %v1380_v0  ;;  %v288_v51 = vld [vmem:[#allocation3 + $0x190] sm:$0x7f] }
  0x4e   :  { %138 = vst [vmem:[#allocation2 + $0x310] sm:$0xff] %v1380_v0  ;;  %139 = vst [vmem:[#allocation2 + $0x318] sm:$0x7] %v1380_v0  ;;  %v289_v52 = vld [vmem:[#allocation3 + $0x198] sm:$0x7f] }
  0x4f   :  { %140 = vst [vmem:[#allocation2 + $0x320] sm:$0xff] %v1380_v0  ;;  %141 = vst [vmem:[#allocation2 + $0x328] sm:$0x7] %v1380_v0  ;;  %v290_v53 = vld [vmem:[#allocation3 + $0x1a0] sm:$0x7f] }
  0x50   :  { %142 = vst [vmem:[#allocation2 + $0x330] sm:$0xff] %v1380_v0  ;;  %143 = vst [vmem:[#allocation2 + $0x338] sm:$0x7] %v1380_v0  ;;  %v291_v54 = vld [vmem:[#allocation3 + $0x1a8] sm:$0x7f] }
  0x51   :  { %144 = vst [vmem:[#allocation2 + $0x340] sm:$0xff] %v1380_v0  ;;  %145 = vst [vmem:[#allocation2 + $0x348] sm:$0x7] %v1380_v0  ;;  %v292_v55 = vld [vmem:[#allocation3 + $0x1b0] sm:$0x7f] }
  0x52   :  { %146 = vst [vmem:[#allocation2 + $0x350] sm:$0xff] %v1380_v0  ;;  %147 = vst [vmem:[#allocation2 + $0x358] sm:$0x7] %v1380_v0  ;;  %v293_v56 = vld [vmem:[#allocation3 + $0x1b8] sm:$0x7f] }
  0x53   :  { %148 = vst [vmem:[#allocation2 + $0x360] sm:$0xff] %v1380_v0  ;;  %149 = vst [vmem:[#allocation2 + $0x368] sm:$0x7] %v1380_v0  ;;  %v294_v57 = vld [vmem:[#allocation3 + $0x1c0] sm:$0x7f] }
  0x54   :  { %150 = vst [vmem:[#allocation2 + $0x370] sm:$0xff] %v1380_v0  ;;  %151 = vst [vmem:[#allocation2 + $0x378] sm:$0x7] %v1380_v0  ;;  %v295_v58 = vld [vmem:[#allocation3 + $0x1c8] sm:$0x7f] }
  0x55   :  { %152 = vst [vmem:[#allocation2 + $0x380] sm:$0xff] %v1380_v0  ;;  %153 = vst [vmem:[#allocation2 + $0x388] sm:$0x7] %v1380_v0  ;;  %v296_v59 = vld [vmem:[#allocation3 + $0x1d0] sm:$0x7f] }
  0x56   :  { %154 = vst [vmem:[#allocation2 + $0x390] sm:$0xff] %v1380_v0  ;;  %155 = vst [vmem:[#allocation2 + $0x398] sm:$0x7] %v1380_v0  ;;  %v297_v60 = vld [vmem:[#allocation3 + $0x1d8] sm:$0x7f] }
  0x57   :  { %156 = vst [vmem:[#allocation2 + $0x3a0] sm:$0xff] %v1380_v0  ;;  %157 = vst [vmem:[#allocation2 + $0x3a8] sm:$0x7] %v1380_v0  ;;  %v298_v61 = vld [vmem:[#allocation3 + $0x1e0] sm:$0x7f] }
  0x58   :  { %158 = vst [vmem:[#allocation2 + $0x3b0] sm:$0xff] %v1380_v0  ;;  %159 = vst [vmem:[#allocation2 + $0x3b8] sm:$0x7] %v1380_v0  ;;  %v299_v62 = vld [vmem:[#allocation3 + $0x1e8] sm:$0x7f] }
  0x59   :  { %160 = vst [vmem:[#allocation2 + $0x3c0] sm:$0xff] %v1380_v0  ;;  %161 = vst [vmem:[#allocation2 + $0x3c8] sm:$0x7] %v1380_v0  ;;  %v300_v63 = vld [vmem:[#allocation3 + $0x1f0] sm:$0x7f] }
  0x5a   :  { %162 = vst [vmem:[#allocation2 + $0x3d0] sm:$0xff] %v1380_v0  ;;  %163 = vst [vmem:[#allocation2 + $0x3d8] sm:$0x7] %v1380_v0 }
  0x5b   :  { %164 = vst [vmem:[#allocation2 + $0x3e0] sm:$0xff] %v1380_v0  ;;  %165 = vst [vmem:[#allocation2 + $0x3e8] sm:$0x7] %v1380_v0 }
  0x5c   :  { %166 = vst [vmem:[#allocation2 + $0x3f0] sm:$0xff] %v1380_v0  ;;  %167 = vst [vmem:[#allocation2 + $0x3f8] sm:$0x7] %v1380_v0 }
  0x5d   :  { %168 = vst [vmem:[#allocation2 + $0x400] sm:$0xff] %v1380_v0  ;;  %169 = vst [vmem:[#allocation2 + $0x408] sm:$0x7] %v1380_v0 }
  0x5e   :  { %170 = vst [vmem:[#allocation2 + $0x410] sm:$0xff] %v1380_v0  ;;  %171 = vst [vmem:[#allocation2 + $0x418] sm:$0x7] %v1380_v0 }
  0x5f   :  { %172 = vst [vmem:[#allocation2 + $0x420] sm:$0xff] %v1380_v0  ;;  %173 = vst [vmem:[#allocation2 + $0x428] sm:$0x7] %v1380_v0 }
  0x60   :  { %174 = vst [vmem:[#allocation2 + $0x430] sm:$0xff] %v1380_v0  ;;  %175 = vst [vmem:[#allocation2 + $0x438] sm:$0x7] %v1380_v0 }
  0x61   :  { %176 = vst [vmem:[#allocation2 + $0x440] sm:$0xff] %v1380_v0  ;;  %177 = vst [vmem:[#allocation2 + $0x448] sm:$0x7] %v1380_v0 }
  0x62   :  { %178 = vst [vmem:[#allocation2 + $0x450] sm:$0xff] %v1380_v0  ;;  %179 = vst [vmem:[#allocation2 + $0x458] sm:$0x7] %v1380_v0 }
  0x63   :  { %180 = vst [vmem:[#allocation2 + $0x460] sm:$0xff] %v1380_v0  ;;  %181 = vst [vmem:[#allocation2 + $0x468] sm:$0x7] %v1380_v0 }
  0x64   :  { %182 = vst [vmem:[#allocation2 + $0x470] sm:$0xff] %v1380_v0  ;;  %183 = vst [vmem:[#allocation2 + $0x478] sm:$0x7] %v1380_v0 }
  0x65   :  { %184 = vst [vmem:[#allocation2 + $0x480] sm:$0xff] %v1380_v0  ;;  %185 = vst [vmem:[#allocation2 + $0x488] sm:$0x7] %v1380_v0 }
  0x66   :  { %186 = vst [vmem:[#allocation2 + $0x490] sm:$0xff] %v1380_v0  ;;  %187 = vst [vmem:[#allocation2 + $0x498] sm:$0x7] %v1380_v0 }
  0x67   :  { %188 = vst [vmem:[#allocation2 + $0x4a0] sm:$0xff] %v1380_v0  ;;  %189 = vst [vmem:[#allocation2 + $0x4a8] sm:$0x7] %v1380_v0 }
  0x68   :  { %190 = vst [vmem:[#allocation2 + $0x4b0] sm:$0xff] %v1380_v0  ;;  %191 = vst [vmem:[#allocation2 + $0x4b8] sm:$0x7] %v1380_v0 }
  0x69   :  { %192 = vst [vmem:[#allocation2 + $0x4c0] sm:$0xff] %v1380_v0  ;;  %193 = vst [vmem:[#allocation2 + $0x4c8] sm:$0x7] %v1380_v0 }
  0x6a   :  { %194 = vst [vmem:[#allocation2 + $0x4d0] sm:$0xff] %v1380_v0  ;;  %195 = vst [vmem:[#allocation2 + $0x4d8] sm:$0x7] %v1380_v0 }
  0x6b   :  { %196 = vst [vmem:[#allocation2 + $0x4e0] sm:$0xff] %v1380_v0  ;;  %197 = vst [vmem:[#allocation2 + $0x4e8] sm:$0x7] %v1380_v0 }
  0x6c   :  { %198 = vst [vmem:[#allocation2 + $0x4f0] sm:$0xff] %v1380_v0  ;;  %199 = vst [vmem:[#allocation2 + $0x4f8] sm:$0x7] %v1380_v0 }
  0x6d   :  { %200 = vst [vmem:[#allocation2 + $0x500] sm:$0xff] %v1380_v0  ;;  %201 = vst [vmem:[#allocation2 + $0x508] sm:$0x7] %v1380_v0 }
  0x6e   :  { %202 = vst [vmem:[#allocation2 + $0x510] sm:$0xff] %v1380_v0  ;;  %203 = vst [vmem:[#allocation2 + $0x518] sm:$0x7] %v1380_v0 }
  0x6f   :  { %204 = vst [vmem:[#allocation2 + $0x520] sm:$0xff] %v1380_v0  ;;  %205 = vst [vmem:[#allocation2 + $0x528] sm:$0x7] %v1380_v0 }
  0x70   :  { %206 = vst [vmem:[#allocation2 + $0x530] sm:$0xff] %v1380_v0  ;;  %207 = vst [vmem:[#allocation2 + $0x538] sm:$0x7] %v1380_v0 }
  0x71   :  { %208 = vst [vmem:[#allocation2 + $0x540] sm:$0xff] %v1380_v0  ;;  %209 = vst [vmem:[#allocation2 + $0x548] sm:$0x7] %v1380_v0 }
  0x72   :  { %210 = vst [vmem:[#allocation2 + $0x550] sm:$0xff] %v1380_v0  ;;  %211 = vst [vmem:[#allocation2 + $0x558] sm:$0x7] %v1380_v0 }
  0x73   :  { %212 = vst [vmem:[#allocation2 + $0x560] sm:$0xff] %v1380_v0  ;;  %213 = vst [vmem:[#allocation2 + $0x568] sm:$0x7] %v1380_v0 }
  0x74   :  { %214 = vst [vmem:[#allocation2 + $0x570] sm:$0xff] %v1380_v0  ;;  %215 = vst [vmem:[#allocation2 + $0x578] sm:$0x7] %v1380_v0 }
  0x75   :  { %216 = vst [vmem:[#allocation2 + $0x580] sm:$0xff] %v1380_v0  ;;  %217 = vst [vmem:[#allocation2 + $0x588] sm:$0x7] %v1380_v0 }
  0x76   :  { %218 = vst [vmem:[#allocation2 + $0x590] sm:$0xff] %v1380_v0  ;;  %219 = vst [vmem:[#allocation2 + $0x598] sm:$0x7] %v1380_v0 }
  0x77   :  { %220 = vst [vmem:[#allocation2 + $0x5a0] sm:$0xff] %v1380_v0  ;;  %221 = vst [vmem:[#allocation2 + $0x5a8] sm:$0x7] %v1380_v0 }
  0x78   :  { %222 = vst [vmem:[#allocation2 + $0x5b0] sm:$0xff] %v1380_v0  ;;  %223 = vst [vmem:[#allocation2 + $0x5b8] sm:$0x7] %v1380_v0 }
  0x79   :  { %224 = vst [vmem:[#allocation2 + $0x5c0] sm:$0xff] %v1380_v0  ;;  %225 = vst [vmem:[#allocation2 + $0x5c8] sm:$0x7] %v1380_v0 }
  0x7a   :  { %226 = vst [vmem:[#allocation2 + $0x5d0] sm:$0xff] %v1380_v0  ;;  %227 = vst [vmem:[#allocation2 + $0x5d8] sm:$0x7] %v1380_v0 }
  0x7b   :  { %228 = vst [vmem:[#allocation2 + $0x5e0] sm:$0xff] %v1380_v0  ;;  %229 = vst [vmem:[#allocation2 + $0x5e8] sm:$0x7] %v1380_v0 }
  0x7c   :  { %230 = vst [vmem:[#allocation2 + $0x5f0] sm:$0xff] %v1380_v0  ;;  %231 = vst [vmem:[#allocation2 + $0x5f8] sm:$0x7] %v1380_v0 }
  0x7d   :  { %232 = vst [vmem:[#allocation2 + $0x600] sm:$0xff] %v1380_v0  ;;  %233 = vst [vmem:[#allocation2 + $0x608] sm:$0x7] %v1380_v0 }
  0x7e   :  { %234 = vst [vmem:[#allocation2 + $0x610] sm:$0xff] %v1380_v0  ;;  %235 = vst [vmem:[#allocation2 + $0x618] sm:$0x7] %v1380_v0 }
  0x7f   :  { %236 = vst [vmem:[#allocation2 + $0x620] sm:$0xff] %v1380_v0  ;;  %237 = vst [vmem:[#allocation2 + $0x628] sm:$0x7] %v1380_v0 }
  0x80   :  { %302 = vst [vmem:[#allocation2 + $0x22] sm:$0x7f] %v238_v1  ;;  %303 = vst [vmem:[#allocation2 + $0x32] sm:$0x7f] %v239_v2 }
  0x81   :  { %304 = vst [vmem:[#allocation2 + $0x42] sm:$0x7f] %v240_v3  ;;  %305 = vst [vmem:[#allocation2 + $0x52] sm:$0x7f] %v241_v4 }
  0x82   :  { %306 = vst [vmem:[#allocation2 + $0x62] sm:$0x7f] %v242_v5  ;;  %307 = vst [vmem:[#allocation2 + $0x72] sm:$0x7f] %v243_v6 }
  0x83   :  { %308 = vst [vmem:[#allocation2 + $0x82] sm:$0x7f] %v244_v7  ;;  %309 = vst [vmem:[#allocation2 + $0xd2] sm:$0x7f] %v245_v8 }
  0x84   :  { %310 = vst [vmem:[#allocation2 + $0xe2] sm:$0x7f] %v246_v9  ;;  %311 = vst [vmem:[#allocation2 + $0xf2] sm:$0x7f] %v247_v10 }
  0x85   :  { %312 = vst [vmem:[#allocation2 + $0x102] sm:$0x7f] %v248_v11  ;;  %313 = vst [vmem:[#allocation2 + $0x112] sm:$0x7f] %v249_v12 }
  0x86   :  { %314 = vst [vmem:[#allocation2 + $0x122] sm:$0x7f] %v250_v13  ;;  %315 = vst [vmem:[#allocation2 + $0x132] sm:$0x7f] %v251_v14 }
  0x87   :  { %316 = vst [vmem:[#allocation2 + $0x182] sm:$0x7f] %v252_v15  ;;  %317 = vst [vmem:[#allocation2 + $0x192] sm:$0x7f] %v253_v16 }
  0x88   :  { %318 = vst [vmem:[#allocation2 + $0x1a2] sm:$0x7f] %v254_v17  ;;  %319 = vst [vmem:[#allocation2 + $0x1b2] sm:$0x7f] %v255_v18 }
  0x89   :  { %320 = vst [vmem:[#allocation2 + $0x1c2] sm:$0x7f] %v256_v19  ;;  %321 = vst [vmem:[#allocation2 + $0x1d2] sm:$0x7f] %v257_v20 }
  0x8a   :  { %322 = vst [vmem:[#allocation2 + $0x1e2] sm:$0x7f] %v258_v21  ;;  %323 = vst [vmem:[#allocation2 + $0x232] sm:$0x7f] %v259_v22 }
  0x8b   :  { %324 = vst [vmem:[#allocation2 + $0x242] sm:$0x7f] %v260_v23  ;;  %325 = vst [vmem:[#allocation2 + $0x252] sm:$0x7f] %v261_v24 }
  0x8c   :  { %326 = vst [vmem:[#allocation2 + $0x262] sm:$0x7f] %v262_v25  ;;  %327 = vst [vmem:[#allocation2 + $0x272] sm:$0x7f] %v263_v26 }
  0x8d   :  { %328 = vst [vmem:[#allocation2 + $0x282] sm:$0x7f] %v264_v27  ;;  %329 = vst [vmem:[#allocation2 + $0x292] sm:$0x7f] %v265_v28 }
  0x8e   :  { %330 = vst [vmem:[#allocation2 + $0x2e2] sm:$0x7f] %v266_v29  ;;  %331 = vst [vmem:[#allocation2 + $0x2f2] sm:$0x7f] %v267_v30 }
  0x8f   :  { %332 = vst [vmem:[#allocation2 + $0x302] sm:$0x7f] %v268_v31  ;;  %333 = vst [vmem:[#allocation2 + $0x312] sm:$0x7f] %v269_v32 }
  0x90   :  { %334 = vst [vmem:[#allocation2 + $0x322] sm:$0x7f] %v270_v33  ;;  %335 = vst [vmem:[#allocation2 + $0x332] sm:$0x7f] %v271_v34 }
  0x91   :  { %336 = vst [vmem:[#allocation2 + $0x342] sm:$0x7f] %v272_v35  ;;  %337 = vst [vmem:[#allocation2 + $0x392] sm:$0x7f] %v273_v36 }
  0x92   :  { %338 = vst [vmem:[#allocation2 + $0x3a2] sm:$0x7f] %v274_v37  ;;  %339 = vst [vmem:[#allocation2 + $0x3b2] sm:$0x7f] %v275_v38 }
  0x93   :  { %340 = vst [vmem:[#allocation2 + $0x3c2] sm:$0x7f] %v276_v39  ;;  %341 = vst [vmem:[#allocation2 + $0x3d2] sm:$0x7f] %v277_v40 }
  0x94   :  { %342 = vst [vmem:[#allocation2 + $0x3e2] sm:$0x7f] %v278_v41  ;;  %343 = vst [vmem:[#allocation2 + $0x3f2] sm:$0x7f] %v279_v42 }
  0x95   :  { %344 = vst [vmem:[#allocation2 + $0x442] sm:$0x7f] %v280_v43  ;;  %345 = vst [vmem:[#allocation2 + $0x452] sm:$0x7f] %v281_v44 }
  0x96   :  { %346 = vst [vmem:[#allocation2 + $0x462] sm:$0x7f] %v282_v45  ;;  %347 = vst [vmem:[#allocation2 + $0x472] sm:$0x7f] %v283_v46 }
  0x97   :  { %348 = vst [vmem:[#allocation2 + $0x482] sm:$0x7f] %v284_v47  ;;  %349 = vst [vmem:[#allocation2 + $0x492] sm:$0x7f] %v285_v48 }
  0x98   :  { %350 = vst [vmem:[#allocation2 + $0x4a2] sm:$0x7f] %v286_v49  ;;  %351 = vst [vmem:[#allocation2 + $0x4f2] sm:$0x7f] %v287_v50 }
  0x99   :  { %352 = vst [vmem:[#allocation2 + $0x502] sm:$0x7f] %v288_v51  ;;  %353 = vst [vmem:[#allocation2 + $0x512] sm:$0x7f] %v289_v52 }
  0x9a   :  { %354 = vst [vmem:[#allocation2 + $0x522] sm:$0x7f] %v290_v53  ;;  %355 = vst [vmem:[#allocation2 + $0x532] sm:$0x7f] %v291_v54 }
  0x9b   :  { %356 = vst [vmem:[#allocation2 + $0x542] sm:$0x7f] %v292_v55  ;;  %357 = vst [vmem:[#allocation2 + $0x552] sm:$0x7f] %v293_v56 }
  0x9c   :  { %358 = vst [vmem:[#allocation2 + $0x5a2] sm:$0x7f] %v294_v57  ;;  %359 = vst [vmem:[#allocation2 + $0x5b2] sm:$0x7f] %v295_v58 }
  0x9d   :  { %360 = vst [vmem:[#allocation2 + $0x5c2] sm:$0x7f] %v296_v59  ;;  %361 = vst [vmem:[#allocation2 + $0x5d2] sm:$0x7f] %v297_v60 }
  0x9e   :  { %362 = vst [vmem:[#allocation2 + $0x5e2] sm:$0x7f] %v298_v61  ;;  %363 = vst [vmem:[#allocation2 + $0x5f2] sm:$0x7f] %v299_v62 }
  0x9f   :  { %364 = vst [vmem:[#allocation2 + $0x602] sm:$0x7f] %v300_v63 }
  0xa0 LB: > { %s371_s1 = smul.u32 176, %s1374_s0  ;;  %s1374_s0 = sphi %s1607_s0, %s370_s0  }
  0xa1   : > { %s380_s21 = smul.u32 40, %s1374_s0 }
  0xa2   : > { %s1614_s22 = scalar_lea.vmem [#allocation2], %s371_s1  ;;  %s1041_s24 = smul.u32 56, %s1374_s0 }
  0xa3   : > { %s1624_s23 = scalar_lea.vmem [#allocation6], %s380_s21  ;;  %s370_s0 = sadd.s32 1, %s1374_s0  }
  0xa4   : > { %v1103_v8 = vld [vmem:[%s1624_s23] ss:$0 sm:$0xff]  ;;  %v1104_v22 = vld [vmem:[%s1624_s23 + $0x1] ss:$0 sm:$0xff]  ;;  %v1105_v41 = vld [vmem:[%s1624_s23 + $0x2] ss:$0 sm:$0xff] }
  0xa5   : > { %v1106_v54 = vld [vmem:[%s1624_s23 + $0x3] ss:$0 sm:$0xff]  ;;  %s1042_s25 = scalar_lea.vmem [#allocation8], %s1041_s24  ;;  %p367_p10 = scmp.ge.s32.totalorder %s370_s0, 9  }
  0xa6   : > { %v373_v0 = vld [vmem:[%s1614_s22] sm:$0x7f]  ;;  %v374_v1 = vld [vmem:[%s1614_s22 + $0x10] sm:$0x7f]  ;;  %s1381_s26 = smov (%p367_p10), [#allocation8]  }
  0xa7   : > { %v375_v2 = vld [vmem:[%s1614_s22 + $0x20] sm:$0x7f]  ;;  %v376_v3 = vld [vmem:[%s1614_s22 + $0x30] sm:$0x7f]  ;;  %v387_v11 = vmul.f32 %v1103_v8, %v373_v0  ;;  %v388_v12 = vmul.f32 %v1103_v8, %v374_v1  ;;  %s1055_s27 = sshll.u32 (%p367_p10), %s1381_s26, 4  ;;  %s1056_s27 = int_to_ptr.vmem [resolvable:$true] %s1055_s27 }
  0xa8   : > { %v377_v4 = vld [vmem:[%s1614_s22 + $0x40] sm:$0x7f]  ;;  %v378_v5 = vld [vmem:[%s1614_s22 + $0x50] sm:$0x7f]  ;;  %v389_v13 = vmul.f32 %v1103_v8, %v375_v2  ;;  %v390_v14 = vmul.f32 %v1103_v8, %v376_v3  ;;  %s1342_s28 = scalar_lea.vmem (%p367_p10), %s1056_s27, 8064  ;;  %p1347_p12 = scmp.lt.s32.totalorder (%p367_p10), %s1056_s27, %s1056_s27 }
  0xa9   : > { %v379_v6 = vld [vmem:[%s1614_s22 + $0x60] sm:$0x7f]  ;;  %v402_v9 = vld [vmem:[%s1614_s22 + $0x11] sm:$0x7f]  ;;  %v391_v18 = vmul.f32 %v1103_v8, %v377_v4  ;;  %v392_v19 = vmul.f32 %v1103_v8, %v378_v5  ;;  %p1343_p11 = scmp.ne.s32.totalorder (%p367_p10), %s1056_s27, %s1342_s28  ;;  %p1348_p13 = scmp.lt.s32.totalorder (%p367_p10), %s1342_s28, %s1342_s28 }
  0xaa   : > { %v401_v7 = vld [vmem:[%s1614_s22 + $0x1] sm:$0x7f]  ;;  %v404_v15 = vld [vmem:[%s1614_s22 + $0x31] sm:$0x7f]  ;;  %v393_v20 = vmul.f32 %v1103_v8, %v379_v6  ;;  %v414_v24 = vmul.f32 %v1104_v22, %v402_v9 }
  0xab   : > { %v403_v10 = vld [vmem:[%s1614_s22 + $0x21] sm:$0x7f]  ;;  %v406_v17 = vld [vmem:[%s1614_s22 + $0x51] sm:$0x7f]  ;;  %v413_v23 = vmul.f32 %v1104_v22, %v401_v7  ;;  %v416_v26 = vmul.f32 %v1104_v22, %v404_v15  ;;  %p1349_p0 = por (%p367_p10), %p1348_p13, %p1347_p12 }
  0xac   : > { %v405_v16 = vld [vmem:[%s1614_s22 + $0x41] sm:$0x7f]  ;;  %v415_v25 = vmul.f32 %v1104_v22, %v403_v10  ;;  %v428_v28 = vld [vmem:[%s1614_s22 + $0x12] sm:$0x7f]  ;;  %v418_v31 = vmul.f32 %v1104_v22, %v406_v17  ;;  %v421_v37 = vadd.f32 %v414_v24, %v388_v12 }
  0xad   : > { %v407_v21 = vld [vmem:[%s1614_s22 + $0x61] sm:$0x7f]  ;;  %v417_v30 = vmul.f32 %v1104_v22, %v405_v16  ;;  %v430_v33 = vld [vmem:[%s1614_s22 + $0x32] sm:$0x7f]  ;;  %v420_v36 = vadd.f32 %v413_v23, %v387_v11  ;;  %v423_v39 = vadd.f32 %v416_v26, %v390_v14  ;;  %v440_v48 = vmul.f32 %v1105_v41, %v428_v28  ;;  %p1350_p1 = pnand (%p367_p10), %p1349_p0, %p1343_p11 }
  0xae   : > { %v427_v27 = vld [vmem:[%s1614_s22 + $0x2] sm:$0x7f]  ;;  %v419_v32 = vmul.f32 %v1104_v22, %v407_v21  ;;  %v432_v35 = vld [vmem:[%s1614_s22 + $0x52] sm:$0x7f]  ;;  %v422_v38 = vadd.f32 %v415_v25, %v389_v13  ;;  %v425_v44 = vadd.f32 %v418_v31, %v392_v19  ;;  %v442_v50 = vmul.f32 %v1105_v41, %v430_v33 }
  0xaf   : > { %v429_v29 = vld [vmem:[%s1614_s22 + $0x22] sm:$0x7f]  ;;  %v424_v43 = vadd.f32 %v417_v30, %v391_v18  ;;  %v439_v46 = vmul.f32 %v1105_v41, %v427_v27  ;;  %v454_v47 = vld [vmem:[%s1614_s22 + $0x13] sm:$0x7f]  ;;  %v444_v55 = vmul.f32 %v1105_v41, %v432_v35  ;;  %v447_v62 = vadd.f32 %v440_v48, %v421_v37 }
  0xb0   : > { %v431_v34 = vld [vmem:[%s1614_s22 + $0x42] sm:$0x7f]  ;;  %v426_v45 = vadd.f32 %v419_v32, %v393_v20  ;;  %v441_v49 = vmul.f32 %v1105_v41, %v429_v29  ;;  %v456_v53 = vld [vmem:[%s1614_s22 + $0x33] sm:$0x7f]  ;;  %v449_v0 = vadd.f32 %v442_v50, %v423_v39  ;;  %v466_v5 = vmul.f32 %v1106_v54, %v454_v47  ;;  %v1125_v47 = vld [vmem:[%s1624_s23 + $0x9] ss:$0 sm:$0xff] }
  0xb1   : > { %v433_v40 = vld [vmem:[%s1614_s22 + $0x62] sm:$0x7f]  ;;  %v443_v51 = vmul.f32 %v1105_v41, %v431_v34  ;;  %v446_v57 = vadd.f32 %v439_v46, %v420_v36  ;;  %v458_v59 = vld [vmem:[%s1614_s22 + $0x53] sm:$0x7f]  ;;  %v451_v3 = vadd.f32 %v444_v55, %v425_v44  ;;  %v468_v9 = vmul.f32 %v1106_v54, %v456_v53 }
  0xb2   : > { %v453_v42 = vld [vmem:[%s1614_s22 + $0x3] sm:$0x7f]  ;;  %v445_v56 = vmul.f32 %v1105_v41, %v433_v40  ;;  %v448_v63 = vadd.f32 %v441_v49, %v422_v38  ;;  %v480_v7 = vld [vmem:[%s1614_s22 + $0x14] sm:$0x7f]  ;;  %v470_v11 = vmul.f32 %v1106_v54, %v458_v59  ;;  %v473_v17 = vadd.f32 %v466_v5, %v447_v62 }
  0xb3   : > { %v455_v52 = vld [vmem:[%s1614_s22 + $0x23] sm:$0x7f]  ;;  %v465_v61 = vmul.f32 %v1106_v54, %v453_v42  ;;  %v450_v1 = vadd.f32 %v443_v51, %v424_v43  ;;  %v482_v14 = vld [vmem:[%s1614_s22 + $0x34] sm:$0x7f]  ;;  %v475_v23 = vadd.f32 %v468_v9, %v449_v0 }
  0xb4   : > { %v457_v58 = vld [vmem:[%s1614_s22 + $0x43] sm:$0x7f]  ;;  %v452_v4 = vadd.f32 %v445_v56, %v426_v45  ;;  %v467_v6 = vmul.f32 %v1106_v54, %v455_v52  ;;  %v484_v19 = vld [vmem:[%s1614_s22 + $0x54] sm:$0x7f]  ;;  %v477_v25 = vadd.f32 %v470_v11, %v451_v3  ;;  %v1134_v3 = vld [vmem:[%s1624_s23 + $0xa] ss:$0 sm:$0xff] }
  0xb5   : > { %v459_v60 = vld [vmem:[%s1614_s22 + $0x63] sm:$0x7f]  ;;  %v469_v10 = vmul.f32 %v1106_v54, %v457_v58  ;;  %v472_v16 = vadd.f32 %v465_v61, %v446_v57  ;;  %v1108_v22 = vld [vmem:[%s1614_s22 + $0x10] sm:$0x7f] }
  0xb6   : > { %v479_v2 = vld [vmem:[%s1614_s22 + $0x4] sm:$0x7f]  ;;  %v471_v12 = vmul.f32 %v1106_v54, %v459_v60  ;;  %v474_v18 = vadd.f32 %v467_v6, %v448_v63  ;;  %v1110_v33 = vld [vmem:[%s1614_s22 + $0x30] sm:$0x7f] }
  0xb7   : > { %v1107_v8 = vld [vmem:[%s1624_s23 + $0x4] ss:$0 sm:$0xff]  ;;  %v476_v24 = vadd.f32 %v469_v10, %v450_v1  ;;  %v1116_v27 = vld [vmem:[%s1624_s23 + $0x8] ss:$0 sm:$0xff]  ;;  %v1112_v38 = vld [vmem:[%s1614_s22 + $0x50] sm:$0x7f] }
  0xb8   : > { %v481_v13 = vld [vmem:[%s1614_s22 + $0x24] sm:$0x7f]  ;;  %v491_v21 = vmul.f32 %v1107_v8, %v479_v2  ;;  %v478_v26 = vadd.f32 %v471_v12, %v452_v4  ;;  %v492_v28 = vmul.f32 %v1107_v8, %v480_v7  ;;  %v494_v30 = vmul.f32 %v1107_v8, %v482_v14  ;;  %v1114_v40 = vld [vmem:[%s1614_s22 + $0x70] sm:$0x7f] }
  0xb9   : > { %v483_v15 = vld [vmem:[%s1614_s22 + $0x44] sm:$0x7f]  ;;  %v493_v29 = vmul.f32 %v1107_v8, %v481_v13  ;;  %v496_v35 = vmul.f32 %v1107_v8, %v484_v19  ;;  %v521_v41 = vmul.f32 %v1116_v27, %v1108_v22  ;;  %v1117_v46 = vld [vmem:[%s1614_s22 + $0x11] sm:$0x7f]  ;;  %v523_v51 = vmul.f32 %v1116_v27, %v1110_v33 }
  0xba   : > { %v485_v20 = vld [vmem:[%s1614_s22 + $0x64] sm:$0x7f]  ;;  %v495_v31 = vmul.f32 %v1107_v8, %v483_v15  ;;  %v498_v37 = vadd.f32 %v491_v21, %v472_v16  ;;  %v499_v42 = vadd.f32 %v492_v28, %v473_v17  ;;  %v501_v44 = vadd.f32 %v494_v30, %v475_v23  ;;  %v1119_v53 = vld [vmem:[%s1614_s22 + $0x31] sm:$0x7f] }
  0xbb   : > { %v1109_v32 = vld [vmem:[%s1614_s22 + $0x20] sm:$0x7f]  ;;  %v497_v36 = vmul.f32 %v1107_v8, %v485_v20  ;;  %v500_v43 = vadd.f32 %v493_v29, %v474_v18  ;;  %v503_v48 = vadd.f32 %v496_v35, %v477_v25  ;;  %v525_v55 = vmul.f32 %v1116_v27, %v1112_v38  ;;  %v1121_v59 = vld [vmem:[%s1614_s22 + $0x51] sm:$0x7f] }
  0xbc   : > { %v1111_v34 = vld [vmem:[%s1614_s22 + $0x40] sm:$0x7f]  ;;  %v502_v45 = vadd.f32 %v495_v31, %v476_v24  ;;  %v522_v50 = vmul.f32 %v1116_v27, %v1109_v32  ;;  %v527_v57 = vmul.f32 %v1116_v27, %v1114_v40  ;;  %v528_v61 = vadd.f32 %v521_v41, %v498_v37  ;;  %v1123_v0 = vld [vmem:[%s1614_s22 + $0x71] sm:$0x7f] }
  0xbd   : > { %v1113_v39 = vld [vmem:[%s1614_s22 + $0x60] sm:$0x7f]  ;;  %v504_v49 = vadd.f32 %v497_v36, %v478_v26  ;;  %v524_v54 = vmul.f32 %v1116_v27, %v1111_v34  ;;  %v530_v63 = vadd.f32 %v523_v51, %v500_v43  ;;  %v547_v1 = vmul.f32 %v1125_v47, %v1117_v46  ;;  %v1126_v2 = vld [vmem:[%s1614_s22 + $0x12] sm:$0x7f] }
  0xbe   : > { %v1118_v52 = vld [vmem:[%s1614_s22 + $0x21] sm:$0x7f]  ;;  %v526_v56 = vmul.f32 %v1116_v27, %v1113_v39  ;;  %v529_v62 = vadd.f32 %v522_v50, %v499_v42  ;;  %v532_v5 = vadd.f32 %v525_v55, %v502_v45  ;;  %v549_v9 = vmul.f32 %v1125_v47, %v1119_v53  ;;  %v1128_v13 = vld [vmem:[%s1614_s22 + $0x32] sm:$0x7f]  ;;  %v1143_v27 = vld [vmem:[%s1624_s23 + $0xb] ss:$0 sm:$0xff] }
  0xbf   : > { %v1120_v58 = vld [vmem:[%s1614_s22 + $0x41] sm:$0x7f]  ;;  %v531_v4 = vadd.f32 %v524_v54, %v501_v44  ;;  %v534_v7 = vadd.f32 %v527_v57, %v504_v49  ;;  %v548_v8 = vmul.f32 %v1125_v47, %v1118_v52  ;;  %v551_v11 = vmul.f32 %v1125_v47, %v1121_v59  ;;  %v1130_v18 = vld [vmem:[%s1614_s22 + $0x52] sm:$0x7f] }
  0xc0   : > { %v1122_v60 = vld [vmem:[%s1614_s22 + $0x61] sm:$0x7f]  ;;  %v533_v6 = vadd.f32 %v526_v56, %v503_v48  ;;  %v550_v10 = vmul.f32 %v1125_v47, %v1120_v58  ;;  %v553_v16 = vmul.f32 %v1125_v47, %v1123_v0  ;;  %v554_v17 = vadd.f32 %v547_v1, %v528_v61  ;;  %v1132_v20 = vld [vmem:[%s1614_s22 + $0x72] sm:$0x7f] }
  0xc1   : > { %v1127_v12 = vld [vmem:[%s1614_s22 + $0x22] sm:$0x7f]  ;;  %v552_v15 = vmul.f32 %v1125_v47, %v1122_v60  ;;  %v573_v21 = vmul.f32 %v1134_v3, %v1126_v2  ;;  %v555_v22 = vadd.f32 %v548_v8, %v529_v62  ;;  %v556_v23 = vadd.f32 %v549_v9, %v530_v63  ;;  %v1135_v26 = vld [vmem:[%s1614_s22 + $0x13] sm:$0x7f]  ;;  %v1152_v47 = vld [vmem:[%s1624_s23 + $0xc] ss:$0 sm:$0xff] }
  0xc2   : > { %v1129_v14 = vld [vmem:[%s1614_s22 + $0x42] sm:$0x7f]  ;;  %v557_v24 = vadd.f32 %v550_v10, %v531_v4  ;;  %v558_v25 = vadd.f32 %v551_v11, %v532_v5  ;;  %v560_v29 = vadd.f32 %v553_v16, %v534_v7  ;;  %v574_v30 = vmul.f32 %v1134_v3, %v1127_v12  ;;  %v1137_v33 = vld [vmem:[%s1614_s22 + $0x33] sm:$0x7f]  ;;  %v1161_v7 = vld [vmem:[%s1624_s23 + $0x10] ss:$0 sm:$0xff] }
  0xc3   : > { %v1131_v19 = vld [vmem:[%s1614_s22 + $0x62] sm:$0x7f]  ;;  %v559_v28 = vadd.f32 %v552_v15, %v533_v6  ;;  %v575_v31 = vmul.f32 %v1134_v3, %v1128_v13  ;;  %v576_v34 = vmul.f32 %v1134_v3, %v1129_v14  ;;  %v577_v35 = vmul.f32 %v1134_v3, %v1130_v18  ;;  %v1139_v39 = vld [vmem:[%s1614_s22 + $0x53] sm:$0x7f] }
  0xc4   : > { %v1136_v32 = vld [vmem:[%s1614_s22 + $0x23] sm:$0x7f]  ;;  %v578_v36 = vmul.f32 %v1134_v3, %v1131_v19  ;;  %v579_v37 = vmul.f32 %v1134_v3, %v1132_v20  ;;  %v580_v41 = vadd.f32 %v573_v21, %v554_v17  ;;  %v581_v42 = vadd.f32 %v574_v30, %v555_v22  ;;  %v1141_v44 = vld [vmem:[%s1614_s22 + $0x73] sm:$0x7f] }
  0xc5   : > { %v1138_v38 = vld [vmem:[%s1614_s22 + $0x43] sm:$0x7f]  ;;  %v582_v43 = vadd.f32 %v575_v31, %v556_v23  ;;  %v599_v45 = vmul.f32 %v1143_v27, %v1135_v26  ;;  %v1144_v46 = vld [vmem:[%s1614_s22 + $0x14] sm:$0x7f]  ;;  %v583_v48 = vadd.f32 %v576_v34, %v557_v24  ;;  %v584_v49 = vadd.f32 %v577_v35, %v558_v25 }
  0xc6   : > { %v1140_v40 = vld [vmem:[%s1614_s22 + $0x63] sm:$0x7f]  ;;  %v585_v50 = vadd.f32 %v578_v36, %v559_v28  ;;  %v586_v51 = vadd.f32 %v579_v37, %v560_v29  ;;  %v600_v52 = vmul.f32 %v1143_v27, %v1136_v32  ;;  %v601_v53 = vmul.f32 %v1143_v27, %v1137_v33  ;;  %v1146_v57 = vld [vmem:[%s1614_s22 + $0x34] sm:$0x7f] }
  0xc7   : > { %v602_v54 = vmul.f32 %v1143_v27, %v1138_v38  ;;  %v603_v55 = vmul.f32 %v1143_v27, %v1139_v39  ;;  %v1145_v56 = vld [vmem:[%s1614_s22 + $0x24] sm:$0x7f]  ;;  %v604_v59 = vmul.f32 %v1143_v27, %v1140_v40  ;;  %v605_v60 = vmul.f32 %v1143_v27, %v1141_v44  ;;  %v1148_v62 = vld [vmem:[%s1614_s22 + $0x54] sm:$0x7f]  ;;  %v1170_v27 = vld [vmem:[%s1624_s23 + $0x11] ss:$0 sm:$0xff] }
  0xc8   : > { %v1147_v58 = vld [vmem:[%s1614_s22 + $0x44] sm:$0x7f]  ;;  %v606_v61 = vadd.f32 %v599_v45, %v580_v41  ;;  %v1150_v0 = vld [vmem:[%s1614_s22 + $0x74] sm:$0x7f]  ;;  %v625_v1 = vmul.f32 %v1152_v47, %v1144_v46  ;;  %v607_v2 = vadd.f32 %v600_v52, %v581_v42  ;;  %v608_v3 = vadd.f32 %v601_v53, %v582_v43 }
  0xc9   : > { %v1149_v63 = vld [vmem:[%s1614_s22 + $0x64] sm:$0x7f]  ;;  %v609_v4 = vadd.f32 %v602_v54, %v583_v48  ;;  %v610_v5 = vadd.f32 %v603_v55, %v584_v49  ;;  %v611_v8 = vadd.f32 %v604_v59, %v585_v50  ;;  %v612_v9 = vadd.f32 %v605_v60, %v586_v51  ;;  %v1154_v12 = vld [vmem:[%s1614_s22 + $0x30] sm:$0x7f] }
  0xca   : > { %v1153_v6 = vld [vmem:[%s1614_s22 + $0x20] sm:$0x7f]  ;;  %v626_v10 = vmul.f32 %v1152_v47, %v1145_v56  ;;  %v627_v11 = vmul.f32 %v1152_v47, %v1146_v57  ;;  %v628_v14 = vmul.f32 %v1152_v47, %v1147_v58  ;;  %v629_v15 = vmul.f32 %v1152_v47, %v1148_v62  ;;  %v1156_v18 = vld [vmem:[%s1614_s22 + $0x50] sm:$0x7f] }
  0xcb   : > { %v1155_v13 = vld [vmem:[%s1614_s22 + $0x40] sm:$0x7f]  ;;  %v630_v16 = vmul.f32 %v1152_v47, %v1149_v63  ;;  %v631_v17 = vmul.f32 %v1152_v47, %v1150_v0  ;;  %v1158_v20 = vld [vmem:[%s1614_s22 + $0x70] sm:$0x7f]  ;;  %v632_v21 = vadd.f32 %v625_v1, %v606_v61  ;;  %v655_v25 = vmul.f32 %v1161_v7, %v1153_v6 }
  0xcc   : > { %v1157_v19 = vld [vmem:[%s1614_s22 + $0x60] sm:$0x7f]  ;;  %v633_v22 = vadd.f32 %v626_v10, %v607_v2  ;;  %v634_v23 = vadd.f32 %v627_v11, %v608_v3  ;;  %v635_v28 = vadd.f32 %v628_v14, %v609_v4  ;;  %v636_v29 = vadd.f32 %v629_v15, %v610_v5  ;;  %v1163_v36 = vld [vmem:[%s1614_s22 + $0x31] sm:$0x7f] }
  0xcd   : > { %v1159_v24 = vld [vmem:[%s1614_s22 + $0x80] sm:$0x7f]  ;;  %v637_v30 = vadd.f32 %v630_v16, %v611_v8  ;;  %v638_v31 = vadd.f32 %v631_v17, %v612_v9  ;;  %v656_v32 = vmul.f32 %v1161_v7, %v1154_v12  ;;  %v657_v33 = vmul.f32 %v1161_v7, %v1155_v13  ;;  %v1165_v38 = vld [vmem:[%s1614_s22 + $0x51] sm:$0x7f] }
  0xce   : > { %v1162_v26 = vld [vmem:[%s1614_s22 + $0x21] sm:$0x7f]  ;;  %v658_v34 = vmul.f32 %v1161_v7, %v1156_v18  ;;  %v659_v35 = vmul.f32 %v1161_v7, %v1157_v19  ;;  %v660_v39 = vmul.f32 %v1161_v7, %v1158_v20  ;;  %v661_v40 = vmul.f32 %v1161_v7, %v1159_v24  ;;  %v1167_v43 = vld [vmem:[%s1614_s22 + $0x71] sm:$0x7f] }
  0xcf   : > { %v1164_v37 = vld [vmem:[%s1614_s22 + $0x41] sm:$0x7f]  ;;  %v662_v41 = vadd.f32 %v655_v25, %v632_v21  ;;  %v681_v45 = vmul.f32 %v1170_v27, %v1162_v26  ;;  %v663_v46 = vadd.f32 %v656_v32, %v633_v22  ;;  %v664_v47 = vadd.f32 %v657_v33, %v634_v23  ;;  %v1179_v51 = vld [vmem:[%s1624_s23 + $0x12] ss:$0 sm:$0xff]  ;;  %v1188_v7 = vld [vmem:[%s1624_s23 + $0x13] ss:$0 sm:$0xff] }
  0xd0   : > { %v1166_v42 = vld [vmem:[%s1614_s22 + $0x61] sm:$0x7f]  ;;  %v665_v48 = vadd.f32 %v658_v34, %v635_v28  ;;  %v666_v49 = vadd.f32 %v659_v35, %v636_v29  ;;  %v667_v52 = vadd.f32 %v660_v39, %v637_v30  ;;  %v668_v53 = vadd.f32 %v661_v40, %v638_v31  ;;  %v1172_v56 = vld [vmem:[%s1614_s22 + $0x32] sm:$0x7f] }
  0xd1   : > { %v1168_v44 = vld [vmem:[%s1614_s22 + $0x81] sm:$0x7f]  ;;  %v682_v54 = vmul.f32 %v1170_v27, %v1163_v36  ;;  %v683_v55 = vmul.f32 %v1170_v27, %v1164_v37  ;;  %v684_v58 = vmul.f32 %v1170_v27, %v1165_v38  ;;  %v685_v59 = vmul.f32 %v1170_v27, %v1166_v42  ;;  %v1174_v62 = vld [vmem:[%s1614_s22 + $0x52] sm:$0x7f] }
  0xd2   : > { %v1171_v50 = vld [vmem:[%s1614_s22 + $0x22] sm:$0x7f]  ;;  %v686_v60 = vmul.f32 %v1170_v27, %v1167_v43  ;;  %v687_v61 = vmul.f32 %v1170_v27, %v1168_v44  ;;  %v1176_v0 = vld [vmem:[%s1614_s22 + $0x72] sm:$0x7f]  ;;  %v688_v1 = vadd.f32 %v681_v45, %v662_v41  ;;  %v708_v12 = vmul.f32 %v1179_v51, %v1172_v56 }
  0xd3   : > { %v1173_v57 = vld [vmem:[%s1614_s22 + $0x42] sm:$0x7f]  ;;  %v689_v2 = vadd.f32 %v682_v54, %v663_v46  ;;  %v690_v3 = vadd.f32 %v683_v55, %v664_v47  ;;  %v707_v5 = vmul.f32 %v1179_v51, %v1171_v50  ;;  %v691_v8 = vadd.f32 %v684_v58, %v665_v48  ;;  %v1181_v16 = vld [vmem:[%s1614_s22 + $0x33] sm:$0x7f] }
  0xd4   : > { %v1175_v63 = vld [vmem:[%s1614_s22 + $0x62] sm:$0x7f]  ;;  %v692_v9 = vadd.f32 %v685_v59, %v666_v49  ;;  %v693_v10 = vadd.f32 %v686_v60, %v667_v52  ;;  %v694_v11 = vadd.f32 %v687_v61, %v668_v53  ;;  %v709_v13 = vmul.f32 %v1179_v51, %v1173_v57  ;;  %v1183_v18 = vld [vmem:[%s1614_s22 + $0x53] sm:$0x7f] }
  0xd5   : > { %v1177_v4 = vld [vmem:[%s1614_s22 + $0x82] sm:$0x7f]  ;;  %v710_v14 = vmul.f32 %v1179_v51, %v1174_v62  ;;  %v711_v15 = vmul.f32 %v1179_v51, %v1175_v63  ;;  %v712_v19 = vmul.f32 %v1179_v51, %v1176_v0  ;;  %v714_v21 = vadd.f32 %v707_v5, %v688_v1  ;;  %v1185_v23 = vld [vmem:[%s1614_s22 + $0x73] sm:$0x7f] }
  0xd6   : > { %v1180_v6 = vld [vmem:[%s1614_s22 + $0x23] sm:$0x7f]  ;;  %v713_v20 = vmul.f32 %v1179_v51, %v1177_v4  ;;  %v715_v26 = vadd.f32 %v708_v12, %v689_v2  ;;  %v716_v27 = vadd.f32 %v709_v13, %v690_v3  ;;  %v1197_v31 = vld [vmem:[%s1624_s23 + $0x14] ss:$0 sm:$0xff]  ;;  %v734_v34 = vmul.f32 %v1188_v7, %v1181_v16  ;;  %v1206_v51 = vld [vmem:[%s1624_s23 + $0x18] ss:$0 sm:$0xff] }
  0xd7   : > { %v1182_v17 = vld [vmem:[%s1614_s22 + $0x43] sm:$0x7f]  ;;  %v733_v25 = vmul.f32 %v1188_v7, %v1180_v6  ;;  %v717_v28 = vadd.f32 %v710_v14, %v691_v8  ;;  %v718_v29 = vadd.f32 %v711_v15, %v692_v9  ;;  %v719_v32 = vadd.f32 %v712_v19, %v693_v10  ;;  %v1190_v36 = vld [vmem:[%s1614_s22 + $0x34] sm:$0x7f] }
  0xd8   : > { %v1184_v22 = vld [vmem:[%s1614_s22 + $0x63] sm:$0x7f]  ;;  %v720_v33 = vadd.f32 %v713_v20, %v694_v11  ;;  %v735_v35 = vmul.f32 %v1188_v7, %v1182_v17  ;;  %v736_v38 = vmul.f32 %v1188_v7, %v1183_v18  ;;  %v738_v40 = vmul.f32 %v1188_v7, %v1185_v23  ;;  %v1192_v42 = vld [vmem:[%s1614_s22 + $0x54] sm:$0x7f] }
  0xd9   : > { %v1186_v24 = vld [vmem:[%s1614_s22 + $0x83] sm:$0x7f]  ;;  %v737_v39 = vmul.f32 %v1188_v7, %v1184_v22  ;;  %v1194_v44 = vld [vmem:[%s1614_s22 + $0x74] sm:$0x7f]  ;;  %v740_v45 = vadd.f32 %v733_v25, %v714_v21  ;;  %v741_v46 = vadd.f32 %v734_v34, %v715_v26  ;;  %v760_v56 = vmul.f32 %v1197_v31, %v1190_v36 }
  0xda   : > { %v1189_v30 = vld [vmem:[%s1614_s22 + $0x24] sm:$0x7f]  ;;  %v739_v41 = vmul.f32 %v1188_v7, %v1186_v24  ;;  %v742_v47 = vadd.f32 %v735_v35, %v716_v27  ;;  %v1198_v50 = vld [vmem:[%s1614_s22 + $0x30] sm:$0x7f]  ;;  %v743_v52 = vadd.f32 %v736_v38, %v717_v28  ;;  %v745_v54 = vadd.f32 %v738_v40, %v719_v32  ;;  %v1215_v11 = vld [vmem:[%s1624_s23 + $0x19] ss:$0 sm:$0xff] }
  0xdb   : > { %v1191_v37 = vld [vmem:[%s1614_s22 + $0x44] sm:$0x7f]  ;;  %v759_v49 = vmul.f32 %v1197_v31, %v1189_v30  ;;  %v744_v53 = vadd.f32 %v737_v39, %v718_v29  ;;  %v762_v58 = vmul.f32 %v1197_v31, %v1192_v42  ;;  %v1200_v61 = vld [vmem:[%s1614_s22 + $0x50] sm:$0x7f]  ;;  %v764_v63 = vmul.f32 %v1197_v31, %v1194_v44 }
  0xdc   : > { %v1193_v43 = vld [vmem:[%s1614_s22 + $0x64] sm:$0x7f]  ;;  %v746_v55 = vadd.f32 %v739_v41, %v720_v33  ;;  %v761_v57 = vmul.f32 %v1197_v31, %v1191_v37  ;;  %v1202_v2 = vld [vmem:[%s1614_s22 + $0x70] sm:$0x7f]  ;;  %v789_v5 = vmul.f32 %v1206_v51, %v1198_v50  ;;  %v767_v6 = vadd.f32 %v760_v56, %v741_v46 }
  0xdd   : > { %v1195_v48 = vld [vmem:[%s1614_s22 + $0x84] sm:$0x7f]  ;;  %v763_v59 = vmul.f32 %v1197_v31, %v1193_v43  ;;  %v766_v1 = vadd.f32 %v759_v49, %v740_v45  ;;  %v1204_v4 = vld [vmem:[%s1614_s22 + $0x90] sm:$0x7f]  ;;  %v769_v8 = vadd.f32 %v762_v58, %v743_v52  ;;  %v771_v12 = vadd.f32 %v764_v63, %v745_v54 }
  0xde   : > { %v1199_v60 = vld [vmem:[%s1614_s22 + $0x40] sm:$0x7f]  ;;  %v765_v0 = vmul.f32 %v1197_v31, %v1195_v48  ;;  %v768_v7 = vadd.f32 %v761_v57, %v742_v47  ;;  %v1207_v10 = vld [vmem:[%s1614_s22 + $0x31] sm:$0x7f]  ;;  %v791_v15 = vmul.f32 %v1206_v51, %v1200_v61  ;;  %v793_v19 = vmul.f32 %v1206_v51, %v1202_v2  ;;  %v1224_v31 = vld [vmem:[%s1624_s23 + $0x1a] ss:$0 sm:$0xff] }
  0xdf   : > { %v1201_v62 = vld [vmem:[%s1614_s22 + $0x60] sm:$0x7f]  ;;  %v770_v9 = vadd.f32 %v763_v59, %v744_v53  ;;  %v790_v14 = vmul.f32 %v1206_v51, %v1199_v60  ;;  %v1209_v17 = vld [vmem:[%s1614_s22 + $0x51] sm:$0x7f]  ;;  %v795_v21 = vmul.f32 %v1206_v51, %v1204_v4  ;;  %v796_v25 = vadd.f32 %v789_v5, %v766_v1 }
  0xe0   : > { %v1203_v3 = vld [vmem:[%s1614_s22 + $0x80] sm:$0x7f]  ;;  %v772_v13 = vadd.f32 %v765_v0, %v746_v55  ;;  %v792_v18 = vmul.f32 %v1206_v51, %v1201_v62  ;;  %v1211_v23 = vld [vmem:[%s1614_s22 + $0x71] sm:$0x7f]  ;;  %v798_v27 = vadd.f32 %v791_v15, %v768_v7  ;;  %v815_v29 = vmul.f32 %v1215_v11, %v1207_v10  ;;  %v1233_v55 = vld [vmem:[%s1624_s23 + $0x1b] ss:$0 sm:$0xff] }
  0xe1   : > { %v1208_v16 = vld [vmem:[%s1614_s22 + $0x41] sm:$0x7f]  ;;  %v794_v20 = vmul.f32 %v1206_v51, %v1203_v3  ;;  %v797_v26 = vadd.f32 %v790_v14, %v767_v6  ;;  %v1213_v28 = vld [vmem:[%s1614_s22 + $0x91] sm:$0x7f]  ;;  %v800_v33 = vadd.f32 %v793_v19, %v770_v9  ;;  %v817_v37 = vmul.f32 %v1215_v11, %v1209_v17 }
  0xe2   : > { %v1210_v22 = vld [vmem:[%s1614_s22 + $0x61] sm:$0x7f]  ;;  %v1216_v30 = vld [vmem:[%s1614_s22 + $0x32] sm:$0x7f]  ;;  %v799_v32 = vadd.f32 %v792_v18, %v769_v8  ;;  %v802_v35 = vadd.f32 %v795_v21, %v772_v13  ;;  %v816_v36 = vmul.f32 %v1215_v11, %v1208_v16  ;;  %v819_v39 = vmul.f32 %v1215_v11, %v1211_v23 }
  0xe3   : > { %v1212_v24 = vld [vmem:[%s1614_s22 + $0x81] sm:$0x7f]  ;;  %v801_v34 = vadd.f32 %v794_v20, %v771_v12  ;;  %v818_v38 = vmul.f32 %v1215_v11, %v1210_v22  ;;  %v1218_v41 = vld [vmem:[%s1614_s22 + $0x52] sm:$0x7f]  ;;  %v821_v44 = vmul.f32 %v1215_v11, %v1213_v28  ;;  %v822_v45 = vadd.f32 %v815_v29, %v796_v25 }
  0xe4   : > { %v1217_v40 = vld [vmem:[%s1614_s22 + $0x42] sm:$0x7f]  ;;  %v820_v43 = vmul.f32 %v1215_v11, %v1212_v24  ;;  %v1220_v46 = vld [vmem:[%s1614_s22 + $0x72] sm:$0x7f]  ;;  %v841_v49 = vmul.f32 %v1224_v31, %v1216_v30  ;;  %v823_v50 = vadd.f32 %v816_v36, %v797_v26  ;;  %v824_v51 = vadd.f32 %v817_v37, %v798_v27  ;;  %v1242_v11 = vld [vmem:[%s1624_s23 + $0x1c] ss:$0 sm:$0xff] }
  0xe5   : > { %v1219_v42 = vld [vmem:[%s1614_s22 + $0x62] sm:$0x7f]  ;;  %v1222_v48 = vld [vmem:[%s1614_s22 + $0x92] sm:$0x7f]  ;;  %v825_v52 = vadd.f32 %v818_v38, %v799_v32  ;;  %v826_v53 = vadd.f32 %v819_v39, %v800_v33  ;;  %v828_v57 = vadd.f32 %v821_v44, %v802_v35  ;;  %v842_v58 = vmul.f32 %v1224_v31, %v1217_v40  ;;  %v1251_v35 = vld [vmem:[%s1624_s23 + $0x20] ss:$0 sm:$0xff] }
  0xe6   : > { %v1221_v47 = vld [vmem:[%s1614_s22 + $0x82] sm:$0x7f]  ;;  %v1225_v54 = vld [vmem:[%s1614_s22 + $0x33] sm:$0x7f]  ;;  %v827_v56 = vadd.f32 %v820_v43, %v801_v34  ;;  %v843_v59 = vmul.f32 %v1224_v31, %v1218_v41  ;;  %v844_v62 = vmul.f32 %v1224_v31, %v1219_v42  ;;  %v845_v63 = vmul.f32 %v1224_v31, %v1220_v46 }
  0xe7   : > { %v1226_v60 = vld [vmem:[%s1614_s22 + $0x43] sm:$0x7f]  ;;  %v1227_v61 = vld [vmem:[%s1614_s22 + $0x53] sm:$0x7f]  ;;  %v846_v0 = vmul.f32 %v1224_v31, %v1221_v47  ;;  %v847_v1 = vmul.f32 %v1224_v31, %v1222_v48  ;;  %v848_v5 = vadd.f32 %v841_v49, %v822_v45  ;;  %v849_v6 = vadd.f32 %v842_v58, %v823_v50 }
  0xe8   : > { %v1228_v2 = vld [vmem:[%s1614_s22 + $0x63] sm:$0x7f]  ;;  %v1229_v3 = vld [vmem:[%s1614_s22 + $0x73] sm:$0x7f]  ;;  %v850_v7 = vadd.f32 %v843_v59, %v824_v51  ;;  %v867_v9 = vmul.f32 %v1233_v55, %v1225_v54  ;;  %v851_v12 = vadd.f32 %v844_v62, %v825_v52  ;;  %v852_v13 = vadd.f32 %v845_v63, %v826_v53 }
  0xe9   : > { %v1230_v4 = vld [vmem:[%s1614_s22 + $0x83] sm:$0x7f]  ;;  %v1231_v8 = vld [vmem:[%s1614_s22 + $0x93] sm:$0x7f]  ;;  %v853_v14 = vadd.f32 %v846_v0, %v827_v56  ;;  %v854_v15 = vadd.f32 %v847_v1, %v828_v57  ;;  %v868_v16 = vmul.f32 %v1233_v55, %v1226_v60  ;;  %v869_v17 = vmul.f32 %v1233_v55, %v1227_v61 }
  0xea   : > { %v1234_v10 = vld [vmem:[%s1614_s22 + $0x34] sm:$0x7f]  ;;  %v870_v18 = vmul.f32 %v1233_v55, %v1228_v2  ;;  %v871_v19 = vmul.f32 %v1233_v55, %v1229_v3  ;;  %v1235_v20 = vld [vmem:[%s1614_s22 + $0x44] sm:$0x7f]  ;;  %v872_v23 = vmul.f32 %v1233_v55, %v1230_v4  ;;  %v873_v24 = vmul.f32 %v1233_v55, %v1231_v8  ;;  %v1260_v55 = vld [vmem:[%s1624_s23 + $0x21] ss:$0 sm:$0xff] }
  0xeb   : > { %v1236_v21 = vld [vmem:[%s1614_s22 + $0x54] sm:$0x7f]  ;;  %v1237_v22 = vld [vmem:[%s1614_s22 + $0x64] sm:$0x7f]  ;;  %v874_v25 = vadd.f32 %v867_v9, %v848_v5  ;;  %v893_v29 = vmul.f32 %v1242_v11, %v1234_v10  ;;  %v875_v30 = vadd.f32 %v868_v16, %v849_v6  ;;  %v876_v31 = vadd.f32 %v869_v17, %v850_v7 }
  0xec   : > { %v1238_v26 = vld [vmem:[%s1614_s22 + $0x74] sm:$0x7f]  ;;  %v1239_v27 = vld [vmem:[%s1614_s22 + $0x84] sm:$0x7f]  ;;  %v877_v32 = vadd.f32 %v870_v18, %v851_v12  ;;  %v878_v33 = vadd.f32 %v871_v19, %v852_v13  ;;  %v879_v36 = vadd.f32 %v872_v23, %v853_v14  ;;  %v880_v37 = vadd.f32 %v873_v24, %v854_v15  ;;  %v1269_v15 = vld [vmem:[%s1624_s23 + $0x22] ss:$0 sm:$0xff] }
  0xed   : > { %v1240_v28 = vld [vmem:[%s1614_s22 + $0x94] sm:$0x7f]  ;;  %v1243_v34 = vld [vmem:[%s1614_s22 + $0x40] sm:$0x7f]  ;;  %v894_v38 = vmul.f32 %v1242_v11, %v1235_v20  ;;  %v895_v39 = vmul.f32 %v1242_v11, %v1236_v21  ;;  %v896_v42 = vmul.f32 %v1242_v11, %v1237_v22  ;;  %v897_v43 = vmul.f32 %v1242_v11, %v1238_v26 }
  0xee   : > { %v1244_v40 = vld [vmem:[%s1614_s22 + $0x50] sm:$0x7f]  ;;  %v1245_v41 = vld [vmem:[%s1614_s22 + $0x60] sm:$0x7f]  ;;  %v898_v44 = vmul.f32 %v1242_v11, %v1239_v27  ;;  %v899_v45 = vmul.f32 %v1242_v11, %v1240_v28  ;;  %v900_v49 = vadd.f32 %v893_v29, %v874_v25  ;;  %v923_v53 = vmul.f32 %v1251_v35, %v1243_v34 }
  0xef   : > { %v1246_v46 = vld [vmem:[%s1614_s22 + $0x70] sm:$0x7f]  ;;  %v1247_v47 = vld [vmem:[%s1614_s22 + $0x80] sm:$0x7f]  ;;  %v901_v50 = vadd.f32 %v894_v38, %v875_v30  ;;  %v902_v51 = vadd.f32 %v895_v39, %v876_v31  ;;  %v903_v56 = vadd.f32 %v896_v42, %v877_v32  ;;  %v904_v57 = vadd.f32 %v897_v43, %v878_v33 }
  0xf0   : > { %v1248_v48 = vld [vmem:[%s1614_s22 + $0x90] sm:$0x7f]  ;;  %v1249_v52 = vld [vmem:[%s1614_s22 + $0xa0] sm:$0x7f]  ;;  %v905_v58 = vadd.f32 %v898_v44, %v879_v36  ;;  %v906_v59 = vadd.f32 %v899_v45, %v880_v37  ;;  %v924_v60 = vmul.f32 %v1251_v35, %v1244_v40  ;;  %v925_v61 = vmul.f32 %v1251_v35, %v1245_v41 }
  0xf1   : > { %v1252_v54 = vld [vmem:[%s1614_s22 + $0x41] sm:$0x7f]  ;;  %v926_v62 = vmul.f32 %v1251_v35, %v1246_v46  ;;  %v927_v63 = vmul.f32 %v1251_v35, %v1247_v47  ;;  %v1253_v0 = vld [vmem:[%s1614_s22 + $0x51] sm:$0x7f]  ;;  %v928_v3 = vmul.f32 %v1251_v35, %v1248_v48  ;;  %v929_v4 = vmul.f32 %v1251_v35, %v1249_v52 }
  0xf2   : > { %v1254_v1 = vld [vmem:[%s1614_s22 + $0x61] sm:$0x7f]  ;;  %v1255_v2 = vld [vmem:[%s1614_s22 + $0x71] sm:$0x7f]  ;;  %v930_v5 = vadd.f32 %v923_v53, %v900_v49  ;;  %v949_v9 = vmul.f32 %v1260_v55, %v1252_v54  ;;  %v931_v10 = vadd.f32 %v924_v60, %v901_v50  ;;  %v932_v11 = vadd.f32 %v925_v61, %v902_v51 }
  0xf3   : > { %v1256_v6 = vld [vmem:[%s1614_s22 + $0x81] sm:$0x7f]  ;;  %v1257_v7 = vld [vmem:[%s1614_s22 + $0x91] sm:$0x7f]  ;;  %v933_v12 = vadd.f32 %v926_v62, %v903_v56  ;;  %v934_v13 = vadd.f32 %v927_v63, %v904_v57  ;;  %v935_v16 = vadd.f32 %v928_v3, %v905_v58  ;;  %v936_v17 = vadd.f32 %v929_v4, %v906_v59 }
  0xf4   : > { %v1258_v8 = vld [vmem:[%s1614_s22 + $0xa1] sm:$0x7f]  ;;  %v950_v18 = vmul.f32 %v1260_v55, %v1253_v0  ;;  %v951_v19 = vmul.f32 %v1260_v55, %v1254_v1  ;;  %v1262_v20 = vld [vmem:[%s1614_s22 + $0x52] sm:$0x7f]  ;;  %v952_v22 = vmul.f32 %v1260_v55, %v1255_v2  ;;  %v953_v23 = vmul.f32 %v1260_v55, %v1256_v6 }
  0xf5   : > { %v1261_v14 = vld [vmem:[%s1614_s22 + $0x42] sm:$0x7f]  ;;  %v954_v24 = vmul.f32 %v1260_v55, %v1257_v7  ;;  %v955_v25 = vmul.f32 %v1260_v55, %v1258_v8  ;;  %v1264_v26 = vld [vmem:[%s1614_s22 + $0x72] sm:$0x7f]  ;;  %v956_v29 = vadd.f32 %v949_v9, %v930_v5  ;;  %v976_v40 = vmul.f32 %v1269_v15, %v1262_v20 }
  0xf6   : > { %v1263_v21 = vld [vmem:[%s1614_s22 + $0x62] sm:$0x7f]  ;;  %v1266_v28 = vld [vmem:[%s1614_s22 + $0x92] sm:$0x7f]  ;;  %v957_v30 = vadd.f32 %v950_v18, %v931_v10  ;;  %v958_v31 = vadd.f32 %v951_v19, %v932_v11  ;;  %v975_v33 = vmul.f32 %v1269_v15, %v1261_v14  ;;  %v959_v36 = vadd.f32 %v952_v22, %v933_v12 }
  0xf7   : > { %v1265_v27 = vld [vmem:[%s1614_s22 + $0x82] sm:$0x7f]  ;;  %v960_v37 = vadd.f32 %v953_v23, %v934_v13  ;;  %v961_v38 = vadd.f32 %v954_v24, %v935_v16  ;;  %v962_v39 = vadd.f32 %v955_v25, %v936_v17  ;;  %v977_v41 = vmul.f32 %v1269_v15, %v1263_v21  ;;  %v1271_v44 = vld [vmem:[%s1614_s22 + $0x53] sm:$0x7f] }
  0xf8   : > { %v1267_v32 = vld [vmem:[%s1614_s22 + $0xa2] sm:$0x7f]  ;;  %v978_v42 = vmul.f32 %v1269_v15, %v1264_v26  ;;  %v979_v43 = vmul.f32 %v1269_v15, %v1265_v27  ;;  %v1273_v46 = vld [vmem:[%s1614_s22 + $0x73] sm:$0x7f]  ;;  %v980_v47 = vmul.f32 %v1269_v15, %v1266_v28  ;;  %v982_v49 = vadd.f32 %v975_v33, %v956_v29 }
  0xf9   : > { %v1270_v34 = vld [vmem:[%s1614_s22 + $0x43] sm:$0x7f]  ;;  %v981_v48 = vmul.f32 %v1269_v15, %v1267_v32  ;;  %v1275_v51 = vld [vmem:[%s1614_s22 + $0x93] sm:$0x7f]  ;;  %v983_v54 = vadd.f32 %v976_v40, %v957_v30  ;;  %v984_v55 = vadd.f32 %v977_v41, %v958_v31 }
  0xfa   : > { %v1278_v35 = vld [vmem:[%s1624_s23 + $0x23] ss:$0 sm:$0xff]  ;;  %v985_v56 = vadd.f32 %v978_v42, %v959_v36  ;;  %v986_v57 = vadd.f32 %v979_v43, %v960_v37  ;;  %v1279_v58 = vld [vmem:[%s1614_s22 + $0x44] sm:$0x7f]  ;;  %v987_v60 = vadd.f32 %v980_v47, %v961_v38  ;;  %v1280_v0 = vld [vmem:[%s1614_s22 + $0x54] sm:$0x7f] }
  0xfb   : > { %v1272_v45 = vld [vmem:[%s1614_s22 + $0x63] sm:$0x7f]  ;;  %v1001_v53 = vmul.f32 %v1278_v35, %v1270_v34  ;;  %v988_v61 = vadd.f32 %v981_v48, %v962_v39  ;;  %v1002_v62 = vmul.f32 %v1278_v35, %v1271_v44  ;;  %v1004_v1 = vmul.f32 %v1278_v35, %v1273_v46  ;;  %v1282_v6 = vld [vmem:[%s1614_s22 + $0x74] sm:$0x7f] }
  0xfc   : > { %v1274_v50 = vld [vmem:[%s1614_s22 + $0x83] sm:$0x7f]  ;;  %v1003_v63 = vmul.f32 %v1278_v35, %v1272_v45  ;;  %v1006_v3 = vmul.f32 %v1278_v35, %v1275_v51  ;;  %v1284_v11 = vld [vmem:[%s1614_s22 + $0x94] sm:$0x7f] }
  0xfd   : > { %v1276_v52 = vld [vmem:[%s1614_s22 + $0xa3] sm:$0x7f]  ;;  %v1005_v2 = vmul.f32 %v1278_v35, %v1274_v50  ;;  %v1008_v8 = vadd.f32 %v1001_v53, %v982_v49  ;;  %v1009_v9 = vadd.f32 %v1002_v62, %v983_v54  ;;  %v1011_v14 = vadd.f32 %v1004_v1, %v985_v56 }
  0xfe   : > { %v1287_v59 = vld [vmem:[%s1624_s23 + $0x24] ss:$0 sm:$0xff]  ;;  %v1007_v4 = vmul.f32 %v1278_v35, %v1276_v52  ;;  %v1010_v10 = vadd.f32 %v1003_v63, %v984_v55  ;;  %v1013_v16 = vadd.f32 %v1006_v3, %v987_v60 }
  0xff   : > { %v1281_v5 = vld [vmem:[%s1614_s22 + $0x64] sm:$0x7f]  ;;  %v1027_v13 = vmul.f32 %v1287_v59, %v1279_v58  ;;  %v1012_v15 = vadd.f32 %v1005_v2, %v986_v57  ;;  %v1028_v18 = vmul.f32 %v1287_v59, %v1280_v0  ;;  %v1030_v20 = vmul.f32 %v1287_v59, %v1282_v6 }
 0x100   : > { %v1283_v7 = vld [vmem:[%s1614_s22 + $0x84] sm:$0x7f]  ;;  %v1014_v17 = vadd.f32 %v1007_v4, %v988_v61  ;;  %v1029_v19 = vmul.f32 %v1287_v59, %v1281_v5  ;;  %v1032_v22 = vmul.f32 %v1287_v59, %v1284_v11 }
 0x101   : > { %v1285_v12 = vld [vmem:[%s1614_s22 + $0xa4] sm:$0x7f]  ;;  %v1031_v21 = vmul.f32 %v1287_v59, %v1283_v7  ;;  %v1034_v24 = vadd.f32 %v1027_v13, %v1008_v8  ;;  %v1035_v25 = vadd.f32 %v1028_v18, %v1009_v9  ;;  %v1037_v27 = vadd.f32 %v1030_v20, %v1011_v14 }
 0x102   : > { %v1033_v23 = vmul.f32 %v1287_v59, %v1285_v12  ;;  %v1036_v26 = vadd.f32 %v1029_v19, %v1010_v10  ;;  %v1039_v29 = vadd.f32 %v1032_v22, %v1013_v16  ;;  %369 = sbr.rel (!%p367_p10) target bundleno = 160 (0xa0), region = 55 }
 0x103   : > { %v1038_v28 = vadd.f32 %v1031_v21, %v1012_v15  ;;  %1043 = vst [vmem:[%s1042_s25] sm:$0x7f] %v1034_v24  ;;  %1044 = vst [vmem:[%s1042_s25 + $0x8] sm:$0x7f] %v1035_v25 }
 0x104   : > { %v1040_v30 = vadd.f32 %v1033_v23, %v1014_v17  ;;  %1045 = vst [vmem:[%s1042_s25 + $0x10] sm:$0x7f] %v1036_v26  ;;  %1046 = vst [vmem:[%s1042_s25 + $0x18] sm:$0x7f] %v1037_v27 }
 0x105   : > { %1047 = vst [vmem:[%s1042_s25 + $0x20] sm:$0x7f] %v1038_v28  ;;  %1048 = vst [vmem:[%s1042_s25 + $0x28] sm:$0x7f] %v1039_v29 }
 0x106   : > { %1049 = vst [vmem:[%s1042_s25 + $0x30] sm:$0x7f] %v1040_v30 }
 0x107   :  { %1353 = shalt.err (!%p1350_p1)
}
 0x108   :  { %1061 = dma.vmem_to_hbm [thread:$0]  %s1056_s27, 8064, %s1832_s2, [#allocation5], %s1377_s12, %s1377_s12, %s1378_s13  }
 0x109   :  { %1370 = dma.done.wait [#allocation5], 8064  }
 0x10a   :  { %1371 = vsyncadd [#allocation5], 4294959232 }
 0x10b   :  { %1065 = vsyncpa [#allocation4], 1 }
 0x10c   :  { %1066 = vsyncpa [#allocation7], 1 }
 0x10d   :  { %1067 = vsyncpa [#allocation5], 1 }

</bundles_post_ra>
